<compile_context>
chip_gen: v7x
topology: tpu7x:2x2x1
jax: 0.10.0
libtpu: 0.0.40
codegen_flags: <defaults>
</compile_context>

<pallas_src>
import jax
import jax.numpy as jnp
from jax.experimental import pallas as pl
from jax.experimental.pallas import tpu as pltpu


# ----------------------------- Pallas kernels ------------------------------

def _fsm_offset_kernel(x_ref, fu_ref, scale_ref, wf_ref, wa_ref, wu_ref,
                       fa_ref, off_ref):
    """Fused FeatureSelectionModule conv + offset 1x1 conv for one row tile.

    x_ref:     (1, T, Cin)  bf16   feat_l rows (channels-last)
    fu_ref:    (1, T, Cout) bf16   upsampled feat_s rows
    scale_ref: (1, 1, Cin)  f32    1 + sigmoid(conv_atten(gap(x)))  per batch elem
    wf_ref:    (Cin, Cout)  bf16   FSM 1x1 conv weight
    wa_ref:    (Cout, 144)  bf16   offset weight rows that multiply feat_arm
    wu_ref:    (Cout, 144)  bf16   offset weight rows for feat_up (2x pre-folded)
    fa_ref:    (1, T, Cout) bf16   out: feat_arm
    off_ref:   (1, T, 144)  f32    out: dcn offsets
    """
    # elementwise work in f32 (v5e VPU has no bf16 path), dots in bf16.
    xs = x_ref[0].astype(jnp.float32) * scale_ref[0]
    xs_bf = xs.astype(jnp.bfloat16)
    fa = jnp.dot(xs_bf, wf_ref[...], preferred_element_type=jnp.float32)
    fa_bf = fa.astype(jnp.bfloat16)
    fa_ref[0] = fa_bf
    off = (jnp.dot(fa_bf, wa_ref[...], preferred_element_type=jnp.float32)
           + jnp.dot(fu_ref[0], wu_ref[...], preferred_element_type=jnp.float32))
    off_ref[0] = off.astype(off_ref.dtype)


def _dcn_kernel(col_ref, fa_ref, w_ref, out_ref):
    """Deformable conv as im2col matmul, fused ReLU + residual add of feat_arm.

    col_ref: (1, T, 9*Cout) bf16, fa_ref: (1, T, Cout) bf16,
    w_ref:   (9*Cout, Cout) bf16, out_ref: (1, T, Cout) f32.
    """
    y = jnp.dot(col_ref[0], w_ref[...], preferred_element_type=jnp.float32)
    out_ref[0] = (jnp.maximum(y, 0.0)
                  + fa_ref[0].astype(jnp.float32)).astype(out_ref.dtype)


# --------------------------- glue (plain JAX) -------------------------------

def _bdot(a, b):
    """bf16-operand / f32-accumulate dot (reference-side mirror of the kernels)."""
    return jnp.dot(a.astype(jnp.bfloat16), b.astype(jnp.bfloat16),
                   preferred_element_type=jnp.float32)


def _resize_matrix(in_size, out_size):
    """Row-interpolation matrix matching F.interpolate(bilinear, align_corners=False)."""
    scale = in_size / out_size
    src = (jnp.arange(out_size, dtype=jnp.float32) + 0.5) * scale - 0.5
    src = jnp.maximum(src, 0.0)
    i0 = jnp.minimum(jnp.floor(src).astype(jnp.int32), in_size - 1)
    i1 = jnp.minimum(i0 + 1, in_size - 1)
    w1 = src - i0.astype(jnp.float32)
    w0 = 1.0 - w1
    m = jnp.zeros((out_size, in_size), jnp.float32)
    m = m.at[jnp.arange(out_size), i0].add(w0)
    m = m.at[jnp.arange(out_size), i1].add(w1)
    return m


def bilinear_resize_to_nhwc(x_nchw, out_hw):
    """Bilinear resize (align_corners=False) producing channels-last output."""
    n, c, h, w = x_nchw.shape
    oh, ow = out_hw
    if (h, w) == (oh, ow):
        return x_nchw.transpose(0, 2, 3, 1)
    ry = _resize_matrix(h, oh)
    rx = _resize_matrix(w, ow)
    return jnp.einsum('nchw,Hh,Ww->nHWc', x_nchw, ry, rx)


def _bilinear_sample(img, y, x):
    """mmcv DeformConv2d bilinear sampling rule. img (H,W,c); y,x (H,W,K)."""
    H, W = img.shape[0], img.shape[1]
    valid = (y > -1.0) & (y < H) & (x > -1.0) & (x < W)
    y0f = jnp.floor(y)
    x0f = jnp.floor(x)
    ly = y - y0f
    lx = x - x0f
    y0 = y0f.astype(jnp.int32)
    x0 = x0f.astype(jnp.int32)

    def gather(yi, xi):
        inb = (yi >= 0) & (yi < H) & (xi >= 0) & (xi < W)
        v = img[jnp.clip(yi, 0, H - 1), jnp.clip(xi, 0, W - 1)]     # (H,W,K,c)
        return jnp.where(inb[..., None], v, 0.0)

    v00 = gather(y0, x0)
    v01 = gather(y0, x0 + 1)
    v10 = gather(y0 + 1, x0)
    v11 = gather(y0 + 1, x0 + 1)
    hy = 1.0 - ly
    hx = 1.0 - lx
    out = ((hy * hx)[..., None] * v00 + (hy * lx)[..., None] * v01 +
           (ly * hx)[..., None] * v10 + (ly * lx)[..., None] * v11)
    return jnp.where(valid[..., None], out, 0.0)


def deform_im2col(x_nhwc, offsets, deform_groups, ksize=3, pad=1, dil=1):
    """Deformable im2col (DCN v1).  offsets: (N,H,W, dg*2*K).  Returns (N, HW, K*C) f32."""
    # TODO(synk): the data-dependent bilinear gather has no clean Pallas/TPU
    # equivalent; it stays in plain JAX, the MAC hot-path is in the Pallas kernel.
    n, h, w, c = x_nhwc.shape
    k = ksize * ksize
    cg = c // deform_groups
    off = offsets.reshape(n, h, w, deform_groups, k, 2)            # (..., [dy, dx])
    ki = (jnp.arange(k) // ksize) * dil
    kj = (jnp.arange(k) % ksize) * dil
    base_y = (jnp.arange(h)[:, None, None] - pad + ki[None, None, :]).astype(jnp.float32)
    base_x = (jnp.arange(w)[None, :, None] - pad + kj[None, None, :]).astype(jnp.float32)
    groups = []
    for g in range(deform_groups):
        img_g = x_nhwc[..., g * cg:(g + 1) * cg]                   # (N,H,W,cg)
        y = base_y[None] + off[:, :, :, g, :, 0]                   # (N,H,W,K)
        x = base_x[None] + off[:, :, :, g, :, 1]
        samp = jax.vmap(_bilinear_sample)(img_g, y, x)             # (N,H,W,K,cg)
        groups.append(samp)
    col = jnp.stack(groups, axis=4)                                # (N,H,W,K,G,cg)
    return col.reshape(n, h * w, k * c)


# -------------------------- parameter construction --------------------------

def init_params(key, in_nc, out_nc, deform_groups=8):
    ks = jax.random.split(key, 4)

    def fill(k, shape, fan_in):                                    # ~ c2_xavier_fill
        bound = (6.0 / fan_in) ** 0.5
        return jax.random.uniform(k, shape, jnp.float32, -bound, bound)

    return dict(
        # FSM 1x1 convs stored as (Cin, Cout) matmul weights (== torch W[:, :, 0, 0].T)
        w_atten=fill(ks[0], (in_nc, in_nc), in_nc),
        w_fsm=fill(ks[1], (in_nc, out_nc), in_nc),
        # offset conv: (2*out_nc, dg*2*9); rows [0:out_nc] multiply feat_arm,
        # rows [out_nc:] multiply (2*feat_up) -- matches torch.cat order.
        w_off=fill(ks[2], (2 * out_nc, deform_groups * 2 * 9), 2 * out_nc),
        # DCN 3x3 weight stored (kh, kw, Cin, Cout) (== torch W.transpose(2,3,1,0))
        # TODO(synk): (k, group, cg) channel order validated only vs the in-script
        # reference gather, not against mmcv DeformConv2d bit-for-bit.
        w_dcn=fill(ks[3], (3, 3, out_nc, out_nc), out_nc * 9),
    )


def _pick_tile(hw, max_tile=512):
    """Largest divisor of hw that is a multiple of 16 and <= max_tile (else full hw)."""
    for t in range(min(hw, max_tile), 0, -1):
        if hw % t == 0 and t % 16 == 0:
            return t
    return hw


# ------------------------------- forward pass -------------------------------

def feature_align_v2(feat_l, feat_s, params, deform_groups=8):
    """feat_l: (N, in_nc, H, W), feat_s: (N, out_nc, h, w)  ->  (N, out_nc, H, W)."""
    n, cin, h, w = feat_l.shape
    cout = params['w_fsm'].shape[1]
    noff = params['w_off'].shape[1]                                # dg*2*9 = 144
    hw = h * w
    m = n * hw
    tile = _pick_tile(hw)
    n_tiles = hw // tile
    par = pltpu.CompilerParams(dimension_semantics=("parallel", "parallel"),
                               vmem_limit_bytes=32 * 1024 * 1024)

    # --- channels-last views; feat_up produced NHWC directly (no NCHW hop) ---
    x_nhwc = feat_l.transpose(0, 2, 3, 1)                          # (N,H,W,Cin) f32
    fu_nhwc = bilinear_resize_to_nhwc(feat_s, (h, w))              # (N,H,W,Cout) f32

    x3 = x_nhwc.reshape(n, hw, cin).astype(jnp.bfloat16)
    fu3 = fu_nhwc.reshape(n, hw, cout).astype(jnp.bfloat16)

    # --- global-avg-pool attention hoisted out of the kernel (tiny (N,Cin)) ---
    mean = x_nhwc.mean(axis=(1, 2))                                # (N, Cin)
    atten = jax.nn.sigmoid(mean @ params['w_atten'])               # (N, Cin)
    scale3 = (1.0 + atten).reshape(n, 1, cin)                      # f32

    # --- bf16 weights (2x feat_up scale folded into the offset weight) ---
    wf_bf = params['w_fsm'].astype(jnp.bfloat16)                   # (Cin, Cout)
    wa_bf = params['w_off'][:cout].astype(jnp.bfloat16)            # (Cout, 144)
    wu2_bf = (2.0 * params['w_off'][cout:]).astype(jnp.bfloat16)   # (Cout, 144)
    wd_bf = params['w_dcn'].reshape(9 * cout, cout).astype(jnp.bfloat16)

    # ---- fused FSM conv + offset conv (Pallas, row-tiled, 2 outputs) ----
    fa3, off3 = pl.pallas_call(
        _fsm_offset_kernel,
        out_shape=(jax.ShapeDtypeStruct((n, hw, cout), jnp.bfloat16),
                   jax.ShapeDtypeStruct((n, hw, noff), jnp.float32)),
        grid=(n, n_tiles),
        in_specs=[pl.BlockSpec((1, tile, cin), lambda b, t: (b, t, 0)),
                  pl.BlockSpec((1, tile, cout), lambda b, t: (b, t, 0)),
                  pl.BlockSpec((1, 1, cin), lambda b, t: (b, 0, 0)),
                  pl.BlockSpec((cin, cout), lambda b, t: (0, 0)),
                  pl.BlockSpec((cout, noff), lambda b, t: (0, 0)),
                  pl.BlockSpec((cout, noff), lambda b, t: (0, 0))],
        out_specs=(pl.BlockSpec((1, tile, cout), lambda b, t: (b, t, 0)),
                   pl.BlockSpec((1, tile, noff), lambda b, t: (b, t, 0))),
        compiler_params=par,
    )(x3, fu3, scale3, wf_bf, wa_bf, wu2_bf)

    # ---- deformable conv 3x3: JAX gather glue + Pallas matmul/ReLU/residual ----
    col3 = deform_im2col(fu_nhwc, off3.reshape(n, h, w, noff),
                         deform_groups).astype(jnp.bfloat16)       # (N, HW, 9*Cout)
    ce = pl.CostEstimate(
        flops=int(2 * m * 9 * cout * cout),
        transcendentals=0,
        bytes_accessed=int(m * 9 * cout * 2 + m * cout * 2
                           + 9 * cout * cout * 2 + m * cout * 4))
    out3 = pl.pallas_call(
        _dcn_kernel,
        out_shape=jax.ShapeDtypeStruct((n, hw, cout), jnp.float32),
        grid=(n, n_tiles),
        in_specs=[pl.BlockSpec((1, tile, 9 * cout), lambda b, t: (b, t, 0)),
                  pl.BlockSpec((1, tile, cout), lambda b, t: (b, t, 0)),
                  pl.BlockSpec((9 * cout, cout), lambda b, t: (0, 0))],
        out_specs=pl.BlockSpec((1, tile, cout), lambda b, t: (b, t, 0)),
        compiler_params=par,
        cost_estimate=ce,
    )(col3, fa3, wd_bf)

    return out3.reshape(n, h, w, cout).transpose(0, 3, 1, 2)       # NCHW at API boundary


# ------------------------------ pure-JAX reference ---------------------------

def reference(feat_l, feat_s, params, deform_groups=8):
    """bf16-consistent pure-JAX reference (same rounding points as the kernels)."""
    n, cin, h, w = feat_l.shape
    cout = params['w_fsm'].shape[1]
    fu = bilinear_resize_to_nhwc(feat_s, (h, w))                   # (N,H,W,Cout) f32
    x = feat_l.transpose(0, 2, 3, 1)
    mean = x.mean(axis=(1, 2))
    atten = jax.nn.sigmoid(mean @ params['w_atten'])
    x_q = x.astype(jnp.bfloat16).astype(jnp.float32)
    xs = x_q * (1.0 + atten)[:, None, None, :]
    fa = _bdot(xs, params['w_fsm'])                                # (N,H,W,Cout) f32
    fa_q = fa.astype(jnp.bfloat16)
    off = _bdot(fa_q, params['w_off'][:cout]) + _bdot(fu, 2.0 * params['w_off'][cout:])
    col = deform_im2col(fu, off, deform_groups)                    # (N, HW, 9*Cout)
    wd2d = params['w_dcn'].reshape(9 * cout, cout)
    y = (jnp.maximum(_bdot(col, wd2d), 0.0)
         + fa_q.reshape(n, h * w, cout).astype(jnp.float32))
    return y.reshape(n, h, w, cout).transpose(0, 3, 1, 2)


# ----------------------------------- main ------------------------------------

if __name__ == "__main__":
    N, IN_NC, OUT_NC, H, W = 2, 48, 32, 16, 16
    DG = 8

    key = jax.random.PRNGKey(0)
    k_l, k_s, k_p = jax.random.split(key, 3)
    feat_l = jax.random.normal(k_l, (N, IN_NC, H, W), jnp.float32)
    feat_s = jax.random.normal(k_s, (N, OUT_NC, H // 2, W // 2), jnp.float32)
    params = init_params(k_p, IN_NC, OUT_NC, DG)

    out = jax.jit(lambda a, b: feature_align_v2(a, b, params, DG))(feat_l, feat_s)
    out = jax.block_until_ready(out)
    assert out.shape == (N, OUT_NC, H, W), out.shape

    ref = jax.block_until_ready(reference(feat_l, feat_s, params, DG))
    err = float(jnp.max(jnp.abs(out - ref)))
    assert jnp.allclose(out, ref, atol=1e-2, rtol=1e-2), err

    print("KERNEL_OK")
</pallas_src>

<mosaic_0001>
module attributes {stable_mosaic.version = 11 : i64} {
  func.func private @main(%arg0: i32) attributes {dimension_semantics = [#tpu.dimension_semantics<core_parallel>], iteration_bounds = array<i64: 2>, tpu.core_type = #tpu.core_type<sc_scalar_subcore>, window_params = []} {
    return
  }
}

module attributes {stable_mosaic.version = 11 : i64} {
  func.func private @main(%arg0: i32) attributes {dimension_semantics = [#tpu.dimension_semantics<core_parallel>], iteration_bounds = array<i64: 2>, tpu.core_type = #tpu.core_type<sc_scalar_subcore>, window_params = []} {
    return
  }
}

module attributes {stable_mosaic.version = 11 : i64} {
  func.func @_fsm_offset_kernel(%arg0: i32, %arg1: i32, %arg2: memref<1x256x48xbf16, #tpu.memory_space<vmem>>, %arg3: memref<1x256x32xbf16, #tpu.memory_space<vmem>>, %arg4: memref<1x1x48xf32, #tpu.memory_space<vmem>>, %arg5: memref<48x32xbf16, #tpu.memory_space<vmem>>, %arg6: memref<32x144xbf16, #tpu.memory_space<vmem>>, %arg7: memref<32x144xbf16, #tpu.memory_space<vmem>>, %arg8: memref<1x256x32xbf16, #tpu.memory_space<vmem>>, %arg9: memref<1x256x144xf32, #tpu.memory_space<vmem>>) attributes {dimension_semantics = [#tpu.dimension_semantics<parallel>, #tpu.dimension_semantics<parallel>], iteration_bounds = array<i64: 2, 1>, scalar_prefetch = 0 : i64, scratch_operands = 0 : i64, tpu.core_type = #tpu.core_type<tc>, window_params = [{transform_indices = @transform_0, window_bounds = array<i64: 1, 256, 48>}, {transform_indices = @transform_1, window_bounds = array<i64: 1, 256, 32>}, {transform_indices = @transform_2, window_bounds = array<i64: 1, 1, 48>}, {pipeline_mode = #tpu.pipeline_mode<synchronous>, transform_indices = @transform_3, window_bounds = array<i64: 48, 32>}, {pipeline_mode = #tpu.pipeline_mode<synchronous>, transform_indices = @transform_4, window_bounds = array<i64: 32, 144>}, {pipeline_mode = #tpu.pipeline_mode<synchronous>, transform_indices = @transform_5, window_bounds = array<i64: 32, 144>}, {transform_indices = @transform_6, window_bounds = array<i64: 1, 256, 32>}, {transform_indices = @transform_7, window_bounds = array<i64: 1, 256, 144>}]} {
    %c0 = arith.constant 0 : index
    %c0_0 = arith.constant 0 : index
    %c0_1 = arith.constant 0 : index
    %0 = vector.load %arg2[%c0, %c0_0, %c0_1] : memref<1x256x48xbf16, #tpu.memory_space<vmem>>, vector<1x256x48xbf16>
    %1 = vector.shape_cast %0 : vector<1x256x48xbf16> to vector<256x48xbf16>
    %2 = arith.extf %1 : vector<256x48xbf16> to vector<256x48xf32>
    %c0_2 = arith.constant 0 : index
    %c0_3 = arith.constant 0 : index
    %c0_4 = arith.constant 0 : index
    %3 = vector.load %arg4[%c0_2, %c0_3, %c0_4] : memref<1x1x48xf32, #tpu.memory_space<vmem>>, vector<1x1x48xf32>
    %4 = vector.shape_cast %3 : vector<1x1x48xf32> to vector<1x48xf32>
    %5 = vector.broadcast %4 : vector<1x48xf32> to vector<256x48xf32>
    %6 = arith.mulf %2, %5 : vector<256x48xf32>
    %7 = arith.truncf %6 : vector<256x48xf32> to vector<256x48xbf16>
    %c0_5 = arith.constant 0 : index
    %c0_6 = arith.constant 0 : index
    %8 = vector.load %arg5[%c0_5, %c0_6] : memref<48x32xbf16, #tpu.memory_space<vmem>>, vector<48x32xbf16>
    %cst = arith.constant dense<0.000000e+00> : vector<256x32xf32>
    %9 = tpu.matmul %7, %8, %cst {dimension_numbers = #tpu.dot_dimension_numbers<[1], [0], [0], [1], [0, 0, 1, 1], [], []>} : vector<256x48xbf16>, vector<48x32xbf16>, vector<256x32xf32> -> vector<256x32xf32>
    %10 = arith.truncf %9 : vector<256x32xf32> to vector<256x32xbf16>
    %c0_7 = arith.constant 0 : index
    %c0_8 = arith.constant 0 : index
    %c0_9 = arith.constant 0 : index
    %11 = vector.load %arg8[%c0_7, %c0_8, %c0_9] : memref<1x256x32xbf16, #tpu.memory_space<vmem>>, vector<1x256x32xbf16>
    %12 = vector.shape_cast %11 : vector<1x256x32xbf16> to vector<256x32xbf16>
    %13 = vector.shape_cast %10 : vector<256x32xbf16> to vector<1x256x32xbf16>
    tpu.vector_store %arg8[%c0_7, %c0_8, %c0_9], %13 {strides = array<i32>} : memref<1x256x32xbf16, #tpu.memory_space<vmem>>, vector<1x256x32xbf16>,
    %c0_10 = arith.constant 0 : index
    %c0_11 = arith.constant 0 : index
    %14 = vector.load %arg6[%c0_10, %c0_11] : memref<32x144xbf16, #tpu.memory_space<vmem>>, vector<32x144xbf16>
    %cst_12 = arith.constant dense<0.000000e+00> : vector<256x144xf32>
    %15 = tpu.matmul %10, %14, %cst_12 {dimension_numbers = #tpu.dot_dimension_numbers<[1], [0], [0], [1], [0, 0, 1, 1], [], []>} : vector<256x32xbf16>, vector<32x144xbf16>, vector<256x144xf32> -> vector<256x144xf32>
    %c0_13 = arith.constant 0 : index
    %c0_14 = arith.constant 0 : index
    %c0_15 = arith.constant 0 : index
    %16 = vector.load %arg3[%c0_13, %c0_14, %c0_15] : memref<1x256x32xbf16, #tpu.memory_space<vmem>>, vector<1x256x32xbf16>
    %17 = vector.shape_cast %16 : vector<1x256x32xbf16> to vector<256x32xbf16>
    %c0_16 = arith.constant 0 : index
    %c0_17 = arith.constant 0 : index
    %18 = vector.load %arg7[%c0_16, %c0_17] : memref<32x144xbf16, #tpu.memory_space<vmem>>, vector<32x144xbf16>
    %cst_18 = arith.constant dense<0.000000e+00> : vector<256x144xf32>
    %19 = tpu.matmul %17, %18, %cst_18 {dimension_numbers = #tpu.dot_dimension_numbers<[1], [0], [0], [1], [0, 0, 1, 1], [], []>} : vector<256x32xbf16>, vector<32x144xbf16>, vector<256x144xf32> -> vector<256x144xf32>
    %20 = arith.addf %15, %19 : vector<256x144xf32>
    %c0_19 = arith.constant 0 : index
    %c0_20 = arith.constant 0 : index
    %c0_21 = arith.constant 0 : index
    %21 = vector.load %arg9[%c0_19, %c0_20, %c0_21] : memref<1x256x144xf32, #tpu.memory_space<vmem>>, vector<1x256x144xf32>
    %22 = vector.shape_cast %21 : vector<1x256x144xf32> to vector<256x144xf32>
    %23 = vector.shape_cast %20 : vector<256x144xf32> to vector<1x256x144xf32>
    tpu.vector_store %arg9[%c0_19, %c0_20, %c0_21], %23 {strides = array<i32>} : memref<1x256x144xf32, #tpu.memory_space<vmem>>, vector<1x256x144xf32>,
    return
  }
  func.func @transform_0(%arg0: i32, %arg1: i32) -> (i32, i32, i32) {
    %c0_i32 = arith.constant 0 : i32
    %c0_i32_0 = arith.constant 0 : i32
    return %arg0, %arg1, %c0_i32 : i32, i32, i32
  }
  func.func @transform_1(%arg0: i32, %arg1: i32) -> (i32, i32, i32) {
    %c0_i32 = arith.constant 0 : i32
    %c0_i32_0 = arith.constant 0 : i32
    return %arg0, %arg1, %c0_i32 : i32, i32, i32
  }
  func.func @transform_2(%arg0: i32, %arg1: i32) -> (i32, i32, i32) {
    %c0_i32 = arith.constant 0 : i32
    %c0_i32_0 = arith.constant 0 : i32
    %c0_i32_1 = arith.constant 0 : i32
    return %arg0, %c0_i32, %c0_i32_0 : i32, i32, i32
  }
  func.func @transform_3(%arg0: i32, %arg1: i32) -> (i32, i32) {
    %c0_i32 = arith.constant 0 : i32
    %c0_i32_0 = arith.constant 0 : i32
    %c0_i32_1 = arith.constant 0 : i32
    return %c0_i32, %c0_i32_0 : i32, i32
  }
  func.func @transform_4(%arg0: i32, %arg1: i32) -> (i32, i32) {
    %c0_i32 = arith.constant 0 : i32
    %c0_i32_0 = arith.constant 0 : i32
    %c0_i32_1 = arith.constant 0 : i32
    return %c0_i32, %c0_i32_0 : i32, i32
  }
  func.func @transform_5(%arg0: i32, %arg1: i32) -> (i32, i32) {
    %c0_i32 = arith.constant 0 : i32
    %c0_i32_0 = arith.constant 0 : i32
    %c0_i32_1 = arith.constant 0 : i32
    return %c0_i32, %c0_i32_0 : i32, i32
  }
  func.func @transform_6(%arg0: i32, %arg1: i32) -> (i32, i32, i32) {
    %c0_i32 = arith.constant 0 : i32
    %c0_i32_0 = arith.constant 0 : i32
    return %arg0, %arg1, %c0_i32 : i32, i32, i32
  }
  func.func @transform_7(%arg0: i32, %arg1: i32) -> (i32, i32, i32) {
    %c0_i32 = arith.constant 0 : i32
    %c0_i32_0 = arith.constant 0 : i32
    return %arg0, %arg1, %c0_i32 : i32, i32, i32
  }
}

module attributes {stable_mosaic.version = 11 : i64} {
  func.func @_dcn_kernel(%arg0: i32, %arg1: i32, %arg2: memref<1x256x288xbf16, #tpu.memory_space<vmem>>, %arg3: memref<1x256x32xbf16, #tpu.memory_space<vmem>>, %arg4: memref<288x32xbf16, #tpu.memory_space<vmem>>, %arg5: memref<1x256x32xf32, #tpu.memory_space<vmem>>) attributes {dimension_semantics = [#tpu.dimension_semantics<parallel>, #tpu.dimension_semantics<parallel>], iteration_bounds = array<i64: 2, 1>, scalar_prefetch = 0 : i64, scratch_operands = 0 : i64, tpu.core_type = #tpu.core_type<tc>, window_params = [{transform_indices = @transform_0, window_bounds = array<i64: 1, 256, 288>}, {transform_indices = @transform_1, window_bounds = array<i64: 1, 256, 32>}, {pipeline_mode = #tpu.pipeline_mode<synchronous>, transform_indices = @transform_2, window_bounds = array<i64: 288, 32>}, {transform_indices = @transform_3, window_bounds = array<i64: 1, 256, 32>}]} {
    %c0 = arith.constant 0 : index
    %c0_0 = arith.constant 0 : index
    %c0_1 = arith.constant 0 : index
    %0 = vector.load %arg2[%c0, %c0_0, %c0_1] : memref<1x256x288xbf16, #tpu.memory_space<vmem>>, vector<1x256x288xbf16>
    %1 = vector.shape_cast %0 : vector<1x256x288xbf16> to vector<256x288xbf16>
    %c0_2 = arith.constant 0 : index
    %c0_3 = arith.constant 0 : index
    %2 = vector.load %arg4[%c0_2, %c0_3] : memref<288x32xbf16, #tpu.memory_space<vmem>>, vector<288x32xbf16>
    %cst = arith.constant dense<0.000000e+00> : vector<256x32xf32>
    %3 = tpu.matmul %1, %2, %cst {dimension_numbers = #tpu.dot_dimension_numbers<[1], [0], [0], [1], [0, 0, 1, 1], [], []>} : vector<256x288xbf16>, vector<288x32xbf16>, vector<256x32xf32> -> vector<256x32xf32>
    %cst_4 = arith.constant 0.000000e+00 : f32
    %4 = vector.broadcast %cst_4 : f32 to vector<256x32xf32>
    %5 = arith.maximumf %3, %4 : vector<256x32xf32>
    %c0_5 = arith.constant 0 : index
    %c0_6 = arith.constant 0 : index
    %c0_7 = arith.constant 0 : index
    %6 = vector.load %arg3[%c0_5, %c0_6, %c0_7] : memref<1x256x32xbf16, #tpu.memory_space<vmem>>, vector<1x256x32xbf16>
    %7 = vector.shape_cast %6 : vector<1x256x32xbf16> to vector<256x32xbf16>
    %8 = arith.extf %7 : vector<256x32xbf16> to vector<256x32xf32>
    %9 = arith.addf %5, %8 : vector<256x32xf32>
    %c0_8 = arith.constant 0 : index
    %c0_9 = arith.constant 0 : index
    %c0_10 = arith.constant 0 : index
    %10 = vector.load %arg5[%c0_8, %c0_9, %c0_10] : memref<1x256x32xf32, #tpu.memory_space<vmem>>, vector<1x256x32xf32>
    %11 = vector.shape_cast %10 : vector<1x256x32xf32> to vector<256x32xf32>
    %12 = vector.shape_cast %9 : vector<256x32xf32> to vector<1x256x32xf32>
    tpu.vector_store %arg5[%c0_8, %c0_9, %c0_10], %12 {strides = array<i32>} : memref<1x256x32xf32, #tpu.memory_space<vmem>>, vector<1x256x32xf32>,
    return
  }
  func.func @transform_0(%arg0: i32, %arg1: i32) -> (i32, i32, i32) {
    %c0_i32 = arith.constant 0 : i32
    %c0_i32_0 = arith.constant 0 : i32
    return %arg0, %arg1, %c0_i32 : i32, i32, i32
  }
  func.func @transform_1(%arg0: i32, %arg1: i32) -> (i32, i32, i32) {
    %c0_i32 = arith.constant 0 : i32
    %c0_i32_0 = arith.constant 0 : i32
    return %arg0, %arg1, %c0_i32 : i32, i32, i32
  }
  func.func @transform_2(%arg0: i32, %arg1: i32) -> (i32, i32) {
    %c0_i32 = arith.constant 0 : i32
    %c0_i32_0 = arith.constant 0 : i32
    %c0_i32_1 = arith.constant 0 : i32
    return %c0_i32, %c0_i32_0 : i32, i32
  }
  func.func @transform_3(%arg0: i32, %arg1: i32) -> (i32, i32, i32) {
    %c0_i32 = arith.constant 0 : i32
    %c0_i32_0 = arith.constant 0 : i32
    return %arg0, %arg1, %c0_i32 : i32, i32, i32
  }
}

</mosaic_0001>

<bundles_post_ra>
// kernel: _lambda_.2
= control target key start
LH: loop header
LB: loop body
LE: loop exit
PB: predicated region body
PF: predicated region fallthrough
CT: control target
= control target key end

     0   :  { %13 = vsyncpa [#allocation3], 0  ;;  %s3014_s0 = inlined_call_operand.vmem [shape: bf16[2,256,48], index: 0, kind: input, shape index: {}]   ;;  %s3015_s1 = inlined_call_operand.vmem [shape: bf16[2,256,32], index: 1, kind: input, shape index: {}]   ;;  %s3016_s2 = inlined_call_operand.vmem [shape: f32[2,1,48], index: 2, kind: input, shape index: {}]   ;;  %s3017_s3 = inlined_call_operand.vmem [shape: bf16[48,32], index: 3, kind: input, shape index: {}]   ;;  %s3018_s4 = inlined_call_operand.vmem [shape: bf16[32,144], index: 4, kind: input, shape index: {}]   ;;  %s3019_s5 = inlined_call_operand.vmem [shape: bf16[32,144], index: 5, kind: input, shape index: {}]   ;;  %s3020_s6 = inlined_call_operand.hbm [shape: bf16[2,256,32], index: 6, kind: output, shape index: {0}]   ;;  %s3021_s7 = inlined_call_operand.vmem [shape: f32[2,256,144], index: 7, kind: output, shape index: {1}]  }
   0x1   :  { %15 = vsyncpa [#allocation3 + $0x1], 0  ;;  %s2363_s24 = smov 0   ;;  %s2365_s25 = smov 0  }
   0x2   :  { %s2367_s26 = smov 0   ;;  %s2369_s27 = smov 0  }
   0x3   :  { %s2371_s28 = smov 0   ;;  %s2373_s29 = smov 0  }
   0x4 LB: > { %s1785_s30 = sadd.s32 4294967295, %s2317_s29   ;;  %s1786_s8 = sadd.s32 4294967294, %s2317_s29   ;;  %s2317_s29 = sphi %s2373_s29, %s21_s29   ;;  %s2313_s28 = sphi %s2371_s28, %s3028_s28   ;;  %s2309_s27 = sphi %s2369_s27, %s3027_s27   ;;  %s2305_s26 = sphi %s2367_s26, %s3026_s26   ;;  %s2301_s25 = sphi %s2365_s25, %s3025_s25   ;;  %s2297_s24 = sphi %s2363_s24, %s3024_s24  }
   0x5   : > { %s33_s9 = sadd.s32 1, %s2313_s28  ;;  %s187_s10 = sadd.s32 1, %s2305_s26 }
   0x6   : > { %p35_p0 = scmp.ge.s32.totalorder %s33_s9, 2  ;;  %p197_p1 = scmp.ne.s32.totalorder %s2305_s26, %s2301_s25 }
   0x7   : > { %p198_p2 = scmp.eq.s32.totalorder %s1785_s30, 1  ;;  %p203_p3 = scmp.ne.s32.totalorder %s2301_s25, %s2297_s24 }
   0x8   : > { %s3030_s9 = smov (%p35_p0, %s33_s9), 0  ;;  %p204_p5 = scmp.eq.s32.totalorder %s1786_s8, 1 }
   0x9   : > { %p2403_p4 = por %p198_p2, %p197_p1  ;;  %s182_s12 = ssub.s32 %s2313_s28, %s3030_s9 }
   0xa   : > { %p1789_p6 = scmp.ge.s32.totalorder %s2317_s29, 1  ;;  %p185_p7 = scmp.eq.s32.totalorder %s182_s12, 0 }
   0xb   : > { %p2410_p8 = por %p204_p5, %p203_p3  ;;  %p291_p9 = scmp.lt.s32.totalorder %s2317_s29, 3 }
   0xc   : > { %s2416_s14 = scalar_select %p185_p7, %s2305_s26, %s187_s10  }
   0xd   : > { %p292_p10 = pnand %p1789_p6, %p291_p9 }
   0xe   : > { %v2208_v0 = vld [vmem:[%s3017_s3] sm:$0xff] (!%p292_p10)   ;;  %p350_p11 = scmp.lt.s32.totalorder (!%p292_p10), %s2309_s27, 1  ;;  %v2209_v1 = vld [vmem:[%s3017_s3 + $0x8] sm:$0xff] (!%p292_p10)   ;;  %v2210_v2 = vld [vmem:[%s3017_s3 + $0x10] sm:$0xff] (!%p292_p10)   ;;  %v2319_v5 = vmov (!%p292_p10), 0   ;;  %vm528_vm0 = vcmask (!%p292_p10), 392192  }
   0xf   : > { %295 = sbr.rel (%p292_p10) target bundleno = 587 (0x24b), region = 44  ;;  %2044 = vmatprep.subr.bf16.mxu0 (!%p292_p10), %v2208_v0  ;;  %v2211_v3 = vld [vmem:[%s3019_s5 + $0x4] ss:$8 sps:$4 sm:$0xff] (!%p292_p10)   ;;  %v2213_v4 = vld [vmem:[%s3019_s5] ss:$8 sps:$4 sm:$0xff] (!%p292_p10)   ;;  %1230 = vmatprep.mubr.bf16.mxu1 (!%p292_p10), %v2319_v5  ;;  %vm1039_vm1 = vcmask (!%p292_p10), 261120  }
  0x10   : > { %2045 = vmatpush3.bf16.msra.mxu0 (!%p292_p10), %v2208_v0  ;;  %2082 = vmatprep.subr.bf16.mxu1 (!%p292_p10), %v2211_v3  ;;  %v2214_v7 = vld [vmem:[%s3019_s5 + $0x14] ss:$8 sps:$4 sm:$0xff] (!%p292_p10)   ;;  %v2458_v8 = vld [vmem:[%s3019_s5 + $0x10] ss:$8 sps:$4 sm:$0xff] (!%p292_p10)   ;;  %v2217_v33 = vld [vmem:[%s3018_s4] ss:$8 sps:$4 sm:$0xff] (!%p292_p10)  }
  0x11   : > { %2046 = vmatprep.subr.bf16.mxu0 (!%p292_p10), %v2209_v1  ;;  %2084 = vmatpush1.bf16.msra.mxu1 (!%p292_p10), %v2213_v4  ;;  %v2219_v34 = vld [vmem:[%s3018_s4 + $0x4] ss:$8 sps:$4 sm:$0xff] (!%p292_p10)   ;;  %v2223_v42 = vld [vmem:[%s3018_s4 + $0x10] ss:$8 sps:$4 sm:$0xff] (!%p292_p10)   ;;  %v2225_v43 = vld [vmem:[%s3018_s4 + $0x14] ss:$8 sps:$4 sm:$0xff] (!%p292_p10)  }
  0x12   : > { %2083 = vmatprep.subr.bf16.mxu1 (!%p292_p10), %v2214_v7  ;;  %vm866_vm2 = vcmask (!%p292_p10), 257024  }
  0x14   : > { %2047 = vmatpush3.bf16.msra.mxu0 (!%p292_p10), %v2209_v1 }
  0x15   : > { %2048 = vmatprep.subr.bf16.mxu0 (!%p292_p10), %v2210_v2  ;;  %2085 = vmatpush1.bf16.msra.mxu1 (!%p292_p10), %v2458_v8 }
  0x16   : > { %s2429_s21 = scalar_select %p350_p11, %s2309_s27, 1  ;;  %1349 = vmatprep.subr.bf16.mxu1 %v2219_v34 }
  0x18   : > { %s1910_s30 = sshll.u32 %s2429_s21, 7  ;;  %s371_s12 = scalar_lea.vmem %s3016_s2, %s2429_s21  ;;  %2049 = vmatpush3.bf16.msra.mxu0 %v2210_v2 }
  0x19   : > { %s2448_s19 = scalar_lea.vmem %s3014_s0, %s1910_s30  ;;  %v2450_v6 = vld [vmem:[%s371_s12] ss:$0 sm:$0xff]  ;;  %s2474_s15 = scalar_lea.vmem %s3015_s1, %s1910_s30  ;;  %1088 = vmatprep.subr.bf16.mxu0 %v2211_v3 }
  0x1a   : > { %v1947_v9 = vld [vmem:[%s2448_s19] sm:$0xff]   ;;  %v2010_v10 = vld [vmem:[%s2448_s19 + $0x8] sm:$0xff]   ;;  %v2011_v11 = vld [vmem:[%s2448_s19 + $0x10] sm:$0xff]   ;;  %s1912_s20 = sshll.u32 %s2429_s21, 9 }
  0x1b   : > { %v1948_v12 = vunpack.c.l.bf16 %v1947_v9  ;;  %v1949_v13 = vunpack.c.h.bf16 %v1947_v9  ;;  %v1952_v14 = vunpack.c.l.bf16 %v2010_v10  ;;  %v1953_v15 = vunpack.c.h.bf16 %v2010_v10  ;;  %v2012_v16 = vld [vmem:[%s2448_s19 + $0x18] sm:$0xff]   ;;  %v2013_v19 = vld [vmem:[%s2448_s19 + $0x20] sm:$0xff]   ;;  %v2014_v38 = vld [vmem:[%s2448_s19 + $0x28] sm:$0xff]  }
  0x1c   : > { %v1956_v17 = vunpack.c.l.bf16 %v2011_v11  ;;  %v1957_v18 = vunpack.c.h.bf16 %v2011_v11  ;;  %v1960_v26 = vunpack.c.l.bf16 %v2012_v16  ;;  %v1961_v27 = vunpack.c.h.bf16 %v2012_v16  ;;  %v2220_v35 = vld [vmem:[%s2474_s15 + $0x58] sm:$0xff]   ;;  %v2015_v41 = vld [vmem:[%s2448_s19 + $0x30] sm:$0xff]   ;;  %v2221_v47 = vld [vmem:[%s2474_s15 + $0x60] sm:$0xff]  }
  0x1d   : > { %v456_v20 = vmul.f32 %v1948_v12, %v2450_v6  ;;  %v457_v21 = vmul.f32 %v1949_v13, %v2450_v6  ;;  %v458_v22 = vmul.f32 %v1952_v14, %v2450_v6  ;;  %v459_v23 = vmul.f32 %v1953_v15, %v2450_v6  ;;  %1880 = vmatmul.mubr.msk.bf16.vlgmr.msra.gmra.mrb[0].mxu1 %vm1039_vm1, %v2220_v35  ;;  %v2016_v51 = vld [vmem:[%s2448_s19 + $0x38] sm:$0xff]   ;;  %v2017_v54 = vld [vmem:[%s2448_s19 + $0x40] sm:$0xff]   ;;  %v2222_v63 = vld [vmem:[%s2474_s15 + $0x68] sm:$0xff]  }
  0x1e   : > { %v460_v24 = vmul.f32 %v1956_v17, %v2450_v6  ;;  %v461_v25 = vmul.f32 %v1957_v18, %v2450_v6  ;;  %v1964_v30 = vunpack.c.l.bf16 %v2013_v19  ;;  %v1965_v31 = vunpack.c.h.bf16 %v2013_v19  ;;  %1350 = vmatpush1.bf16.msra.mxu1 %v2217_v33  ;;  %1240 = vmatprep.mubr.bf16.mxu1 %v2319_v5  ;;  %v2226_v14 = vld [vmem:[%s2474_s15 + $0x70] sm:$0xff]   ;;  %v2020_v19 = vld [vmem:[%s2448_s19 + $0x58] sm:$0xff]  }
  0x1f   : > { %v488_v28 = vpack.c.bf16 %v457_v21, %v456_v20  ;;  %v489_v29 = vpack.c.bf16 %v459_v23, %v458_v22  ;;  %v462_v36 = vmul.f32 %v1960_v26, %v2450_v6  ;;  %v463_v37 = vmul.f32 %v1961_v27, %v2450_v6  ;;  %1351 = vmatprep.subr.bf16.mxu1 %v2225_v43  ;;  %v2021_v20 = vld [vmem:[%s2448_s19 + $0x60] sm:$0xff]   ;;  %v2227_v27 = vld [vmem:[%s2474_s15 + $0x78] sm:$0xff]   ;;  %v2023_v33 = vld [vmem:[%s2448_s19 + $0x70] sm:$0xff]  }
  0x20   : > { %v490_v32 = vpack.c.bf16 %v461_v25, %v460_v24  ;;  %v464_v39 = vmul.f32 %v1964_v30, %v2450_v6  ;;  %v465_v40 = vmul.f32 %v1965_v31, %v2450_v6  ;;  %v1968_v45 = vunpack.c.l.bf16 %v2014_v38 }
  0x21   : > { %2050 = vmatprep.mubr.msk.bf16.mxu0 %vm528_vm0, %v488_v28  ;;  %v491_v44 = vpack.c.bf16 %v463_v37, %v462_v36  ;;  %v1969_v46 = vunpack.c.h.bf16 %v2014_v38  ;;  %v1972_v49 = vunpack.c.l.bf16 %v2015_v41  ;;  %v1973_v50 = vunpack.c.h.bf16 %v2015_v41 }
  0x22   : > { %2051 = vmatmul.mubr.msk.bf16.vlgmr.msra.gmra.mrb[0].mxu0 %vm528_vm0, %v489_v29  ;;  %v492_v48 = vpack.c.bf16 %v465_v40, %v464_v39  ;;  %1352 = vmatpush1.bf16.msra.mxu1 %v2223_v42  ;;  %v466_v52 = vmul.f32 %v1968_v45, %v2450_v6  ;;  %v1976_v58 = vunpack.c.l.bf16 %v2016_v51  ;;  %v1977_v59 = vunpack.c.h.bf16 %v2016_v51 }
  0x23   : > { %2054 = vmatprep.mubr.msk.bf16.mxu0 %vm528_vm0, %v490_v32  ;;  %1089 = vmatpush1.bf16.msra.mxu0 %v2213_v4  ;;  %v467_v53 = vmul.f32 %v1969_v46, %v2450_v6  ;;  %v468_v55 = vmul.f32 %v1972_v49, %v2450_v6  ;;  %v469_v56 = vmul.f32 %v1973_v50, %v2450_v6  ;;  %v1980_v61 = vunpack.c.l.bf16 %v2017_v54  ;;  %v2018_v4 = vld [vmem:[%s2448_s19 + $0x48] sm:$0xff]  }
  0x24   : > { %1090 = vmatprep.subr.bf16.mxu0 %v2214_v7  ;;  %v1981_v62 = vunpack.c.h.bf16 %v2017_v54  ;;  %v470_v0 = vmul.f32 %v1976_v58, %v2450_v6  ;;  %v471_v1 = vmul.f32 %v1977_v59, %v2450_v6  ;;  %v2019_v7 = vld [vmem:[%s2448_s19 + $0x50] sm:$0xff]   ;;  %v1984_v9 = vunpack.c.l.bf16 %v2018_v4  ;;  %v2022_v32 = vld [vmem:[%s2448_s19 + $0x68] sm:$0xff]   ;;  %v2231_v54 = vld [vmem:[%s2474_s15 + $0x18] sm:$0xff]  }
  0x25   : > { %1881 = vmatmul.mubr.msk.bf16.gmra.mrb[4].mxu1 %vm1039_vm1, %v2221_v47  ;;  %v493_v57 = vpack.c.bf16 %v467_v53, %v466_v52  ;;  %v494_v60 = vpack.c.bf16 %v469_v56, %v468_v55  ;;  %v472_v2 = vmul.f32 %v1980_v61, %v2450_v6  ;;  %v1985_v10 = vunpack.c.h.bf16 %v2018_v4  ;;  %v2228_v52 = vld [vmem:[%s2474_s15] sm:$0xff]   ;;  %v2229_v53 = vld [vmem:[%s2474_s15 + $0x8] sm:$0xff]   ;;  %v2235_v58 = vld [vmem:[%s2474_s15 + $0x38] sm:$0xff]  }
  0x26   : > { %1250 = vmatprep.mubr.bf16.mxu1 %v2319_v5  ;;  %v473_v3 = vmul.f32 %v1981_v62, %v2450_v6  ;;  %v1988_v12 = vunpack.c.l.bf16 %v2019_v7  ;;  %v1989_v13 = vunpack.c.h.bf16 %v2019_v7  ;;  %v474_v15 = vmul.f32 %v1984_v9, %v2450_v6  ;;  %v2232_v55 = vld [vmem:[%s2474_s15 + $0x20] sm:$0xff]   ;;  %v2233_v56 = vld [vmem:[%s2474_s15 + $0x28] sm:$0xff]   ;;  %v2238_v61 = vld [vmem:[%s2474_s15 + $0x50] sm:$0xff]  }
  0x27   : > { %1091 = vmatpush1.bf16.msra.mxu0 %v2458_v8  ;;  %v495_v8 = vpack.c.bf16 %v471_v1, %v470_v0  ;;  %v475_v16 = vmul.f32 %v1985_v10, %v2450_v6  ;;  %v1992_v22 = vunpack.c.l.bf16 %v2020_v19  ;;  %v1993_v23 = vunpack.c.h.bf16 %v2020_v19  ;;  %v2236_v59 = vld [vmem:[%s2474_s15 + $0x40] sm:$0xff]  }
  0x28   : > { %v496_v11 = vpack.c.bf16 %v473_v3, %v472_v2  ;;  %v476_v17 = vmul.f32 %v1988_v12, %v2450_v6  ;;  %v477_v18 = vmul.f32 %v1989_v13, %v2450_v6  ;;  %v1996_v25 = vunpack.c.l.bf16 %v2021_v20 }
  0x29   : > { %v497_v21 = vpack.c.bf16 %v475_v16, %v474_v15  ;;  %v1997_v26 = vunpack.c.h.bf16 %v2021_v20  ;;  %v478_v28 = vmul.f32 %v1992_v22, %v2450_v6  ;;  %v479_v29 = vmul.f32 %v1993_v23, %v2450_v6 }
  0x2a   : > { %2055 = vmatmul.mubr.msk.bf16.gmra.mrb[4].mxu0 %vm528_vm0, %v491_v44  ;;  %v498_v24 = vpack.c.bf16 %v477_v18, %v476_v17  ;;  %v480_v30 = vmul.f32 %v1996_v25, %v2450_v6  ;;  %v2000_v35 = vunpack.c.l.bf16 %v2022_v32  ;;  %v2001_v36 = vunpack.c.h.bf16 %v2022_v32  ;;  %v2024_v44 = vld [vmem:[%s2448_s19 + $0x78] sm:$0xff]   ;;  %s334_s19 = sand.u32 1, %s2301_s25  }
  0x2b   : > { %2058 = vmatprep.mubr.msk.bf16.mxu0 %vm528_vm0, %v492_v48  ;;  %v481_v31 = vmul.f32 %v1997_v26, %v2450_v6  ;;  %v499_v34 = vpack.c.bf16 %v479_v29, %v478_v28  ;;  %v2004_v38 = vunpack.c.l.bf16 %v2023_v33  ;;  %v2005_v39 = vunpack.c.h.bf16 %v2023_v33  ;;  %s1790_s10 = sshll.u32 %s334_s19, 7  ;;  %s2821_s22 = scalar_lea.sflag [#allocation3], %s334_s19 }
  0x2c   : > { %v482_v40 = vmul.f32 %v2000_v35, %v2450_v6  ;;  %v483_v41 = vmul.f32 %v2001_v36, %v2450_v6  ;;  %v2008_v46 = vunpack.c.l.bf16 %v2024_v44  ;;  %v2009_v47 = vunpack.c.h.bf16 %v2024_v44  ;;  %s2596_s12 = scalar_lea.vmem [#allocation2], %s1790_s10 }
  0x2d   : > { %1882 = vmatmul.mubr.msk.bf16.gmra.mrb[8].mxu1 %vm1039_vm1, %v2222_v63  ;;  %v500_v37 = vpack.c.bf16 %v481_v31, %v480_v30  ;;  %v484_v42 = vmul.f32 %v2004_v38, %v2450_v6  ;;  %v485_v43 = vmul.f32 %v2005_v39, %v2450_v6  ;;  %s1633_s16 = sshll.u32 %s2596_s12, 4  ;;  %s2816_s16 = int_to_ptr.vmem [resolvable:$true] %s1633_s16 }
  0x2e   : > { %1260 = vmatprep.mubr.bf16.mxu1 %v2319_v5  ;;  %v501_v45 = vpack.c.bf16 %v483_v41, %v482_v40  ;;  %v486_v49 = vmul.f32 %v2008_v46, %v2450_v6  ;;  %v487_v50 = vmul.f32 %v2009_v47, %v2450_v6  ;;  %v2230_v6 = vld [vmem:[%s2474_s15 + $0x10] sm:$0xff]   ;;  %s2239_s23 = scalar_lea.vmem %s2816_s16, 2048 }
  0x2f   : > { %v502_v48 = vpack.c.bf16 %v485_v43, %v484_v42  ;;  %p2240_p12 = scmp.ne.s32.totalorder %s2816_s16, %s2239_s23 }
  0x30   : > { %v503_v51 = vpack.c.bf16 %v487_v50, %v486_v49 }
  0x31   : > { %p2241_p13 = pnand %p2240_p12, %p2403_p4 }
  0x32   : > { %2059 = vmatmul.mubr.msk.bf16.gmra.mrb[8].mxu0 %vm528_vm0, %v493_v57  ;;  %v2234_v57 = vld [vmem:[%s2474_s15 + $0x30] sm:$0xff]  }
  0x33   : > { %2062 = vmatprep.mubr.msk.bf16.mxu0 %vm528_vm0, %v494_v60  ;;  %v2237_v60 = vld [vmem:[%s2474_s15 + $0x48] sm:$0xff]   ;;  %s1945_s15 = sshll.u32 %s2309_s27, 11  ;;  %p2242_p0 = pneg %p2241_p13 }
  0x34   : > { %s2814_s18 = scalar_lea.hbm %s3020_s6, %s1945_s15  ;;  %s2320_s27 = smov [#allocation2]  }
  0x35   : > { %1883 = vmatmul.mubr.msk.bf16.gmra.mrb[12].mxu1 %vm1039_vm1, %v2226_v14  ;;  %s2243_s8 = sshll.u32 %s2320_s27, 4  ;;  %s2244_s8 = int_to_ptr.vmem [resolvable:$false] %s2243_s8 }
  0x36   : > { %1270 = vmatprep.mubr.bf16.mxu1 %v2319_v5  ;;  %s2245_s10 = scalar_lea.vmem %s2244_s8, 4096  ;;  %p2246_p1 = scmp.lt.s32.totalorder %s2816_s16, %s2244_s8 }
  0x37   : > { %p2247_p2 = scmp.lt.s32.totalorder %s2245_s10, %s2239_s23 }
  0x39   : > { %p2248_p3 = por %p2247_p2, %p2246_p1 }
  0x3a   : > { %2063 = vmatmul.mubr.msk.bf16.gmra.mrb[12].mxu0 %vm528_vm0, %v495_v8 }
  0x3b   : > { %2066 = vmatprep.mubr.msk.bf16.mxu0 %vm528_vm0, %v496_v11  ;;  %p2249_p5 = pnand %p2248_p3, %p2242_p0 }
  0x3d   : > { %1884 = vmatmul.mubr.msk.bf16.gmra.mrb[16].mxu1 %vm1039_vm1, %v2227_v27 }
  0x3e   : > { %1381 = vmatprep.mubr.bf16.mxu1 %v2319_v5 }
  0x42   : > { %2067 = vmatmul.mubr.msk.bf16.gmra.mrb[16].mxu0 %vm528_vm0, %v497_v21 }
  0x43   : > { %2070 = vmatprep.mubr.msk.bf16.mxu0 %vm528_vm0, %v498_v24 }
  0x4a   : > { %2071 = vmatmul.mubr.msk.bf16.gmra.mrb[20].mxu0 %vm528_vm0, %v499_v34 }
  0x4b   : > { %2074 = vmatprep.mubr.msk.bf16.mxu0 %vm528_vm0, %v500_v37 }
  0x52   : > { %2075 = vmatmul.mubr.msk.bf16.gmra.mrb[24].mxu0 %vm528_vm0, %v501_v45 }
  0x53   : > { %2078 = vmatprep.mubr.msk.bf16.mxu0 %vm528_vm0, %v502_v48 }
  0x5a   : > { %2079 = vmatmul.mubr.msk.bf16.gmra.mrb[28].mxu0 %vm528_vm0, %v503_v51 }
  0x5b   : > { %1120 = vmatprep.mubr.bf16.mxu0 %v2319_v5 }
  0x62   : > { %1869 = vmatmul.mubr.msk.bf16.vlgmr.msra.gmra.mrb[32].mxu0 %vm1039_vm1, %v2228_v52 }
  0x63   : > { %1130 = vmatprep.mubr.bf16.mxu0 %v2319_v5 }
  0x6a   : > { %1870 = vmatmul.mubr.msk.bf16.gmra.mrb[36].mxu0 %vm1039_vm1, %v2229_v53 }
  0x6b   : > { %1140 = vmatprep.mubr.bf16.mxu0 %v2319_v5 }
  0x72   : > { %1871 = vmatmul.mubr.msk.bf16.gmra.mrb[40].mxu0 %vm1039_vm1, %v2230_v6 }
  0x73   : > { %1150 = vmatprep.mubr.bf16.mxu0 %v2319_v5 }
  0x7a   : > { %1872 = vmatmul.mubr.msk.bf16.gmra.mrb[44].mxu0 %vm1039_vm1, %v2231_v54 }
  0x7b   : > { %1160 = vmatprep.mubr.bf16.mxu0 %v2319_v5 }
  0x82   : > { %1873 = vmatmul.mubr.msk.bf16.gmra.mrb[48].mxu0 %vm1039_vm1, %v2232_v55 }
  0x83   : > { %1170 = vmatprep.mubr.bf16.mxu0 %v2319_v5 }
  0x8a   : > { %1874 = vmatmul.mubr.msk.bf16.gmra.mrb[52].mxu0 %vm1039_vm1, %v2233_v56 }
  0x8b   : > { %1180 = vmatprep.mubr.bf16.mxu0 %v2319_v5 }
  0x92   : > { %1875 = vmatmul.mubr.msk.bf16.gmra.mrb[56].mxu0 %vm1039_vm1, %v2234_v57 }
  0x93   : > { %1190 = vmatprep.mubr.bf16.mxu0 %v2319_v5 }
  0x9a   : > { %1876 = vmatmul.mubr.msk.bf16.gmra.mrb[60].mxu0 %vm1039_vm1, %v2235_v58 }
  0x9b   : > { %1200 = vmatprep.mubr.bf16.mxu0 %v2319_v5 }
  0xa2   : > { %1877 = vmatmul.mubr.msk.bf16.gmra.mrb[64].mxu0 %vm1039_vm1, %v2236_v59 }
  0xa3   : > { %1210 = vmatprep.mubr.bf16.mxu0 %v2319_v5 }
  0xaa   : > { %1878 = vmatmul.mubr.msk.bf16.gmra.mrb[68].mxu0 %vm1039_vm1, %v2237_v60 }
  0xab   : > { %1220 = vmatprep.mubr.bf16.mxu0 %v2319_v5 }
  0xb2   : > { %1879 = vmatmul.mubr.msk.bf16.gmra.mrb[72].mxu0 %vm1039_vm1, %v2238_v61 }
  0xf5   : > { %v2052_v62 = vpop.f32.mrb[0].mxu0 }
  0xf6   : > { %v1915_v63 = vpack.c.bf16 %v2052_v62, %v2052_v62  ;;  %v611_v0 = vpop.f32.mrb[1].mxu0 }
  0xf7   : > { %v1913_v1 = vpack.c.bf16 %v611_v0, %v611_v0  ;;  %v2053_v2 = vpop.f32.mrb[2].mxu0 }
  0xf8   : > { %869 = vst.msk [vmem:[%s2596_s12 + $0x8] sm:$0xf] %vm866_vm2, %v1915_v63  ;;  %v739_v3 = vpack.c.bf16 %v2053_v2, %v2052_v62  ;;  %v1916_v4 = vpack.c.bf16 %v2053_v2, %v2053_v2  ;;  %v614_v7 = vpop.f32.mrb[3].mxu0 }
  0xf9   : > { %867 = vst.msk [vmem:[%s2596_s12] sm:$0xf] %vm866_vm2, %v1913_v1  ;;  %v738_v8 = vpack.c.bf16 %v614_v7, %v611_v0  ;;  %v1914_v9 = vpack.c.bf16 %v614_v7, %v614_v7 }
  0xfa   : > { %870 = vst.msk [vmem:[%s2596_s12 + $0xc] sm:$0xf] %vm866_vm2, %v1916_v4 }
  0xfb   : > { %868 = vst.msk [vmem:[%s2596_s12 + $0x4] sm:$0xf] %vm866_vm2, %v1914_v9  ;;  %1889 = vmatmul.mubr.msk.bf16.vlgmr.msra.gmra.mrb[20].mxu1 %vm1039_vm1, %v738_v8 }
  0xfc   : > { %1391 = vmatprep.mubr.bf16.mxu1 %v2319_v5 }
  0xfd   : > { %v2056_v10 = vpop.f32.mrb[4].mxu0 }
  0xfe   : > { %v1919_v11 = vpack.c.bf16 %v2056_v10, %v2056_v10  ;;  %v627_v12 = vpop.f32.mrb[5].mxu0 }
  0xff   : > { %v1917_v13 = vpack.c.bf16 %v627_v12, %v627_v12  ;;  %v2057_v14 = vpop.f32.mrb[6].mxu0 }
 0x100   : > { %873 = vst.msk [vmem:[%s2596_s12 + $0x18] sm:$0xf] %vm866_vm2, %v1919_v11  ;;  %v741_v15 = vpack.c.bf16 %v2057_v14, %v2056_v10  ;;  %v1920_v16 = vpack.c.bf16 %v2057_v14, %v2057_v14  ;;  %v630_v17 = vpop.f32.mrb[7].mxu0 }
 0x101   : > { %871 = vst.msk [vmem:[%s2596_s12 + $0x10] sm:$0xf] %vm866_vm2, %v1917_v13  ;;  %v740_v18 = vpack.c.bf16 %v630_v17, %v627_v12  ;;  %v1918_v19 = vpack.c.bf16 %v630_v17, %v630_v17 }
 0x102   : > { %874 = vst.msk [vmem:[%s2596_s12 + $0x1c] sm:$0xf] %vm866_vm2, %v1920_v16 }
 0x103   : > { %1890 = vmatmul.mubr.msk.bf16.gmra.mrb[24].mxu1 %vm1039_vm1, %v739_v3  ;;  %872 = vst.msk [vmem:[%s2596_s12 + $0x14] sm:$0xf] %vm866_vm2, %v1918_v19 }
 0x104   : > { %1401 = vmatprep.mubr.bf16.mxu1 %v2319_v5 }
 0x105   : > { %v2060_v20 = vpop.f32.mrb[8].mxu0 }
 0x106   : > { %v1923_v21 = vpack.c.bf16 %v2060_v20, %v2060_v20  ;;  %v643_v22 = vpop.f32.mrb[9].mxu0 }
 0x107   : > { %v1921_v23 = vpack.c.bf16 %v643_v22, %v643_v22  ;;  %v2061_v24 = vpop.f32.mrb[10].mxu0 }
 0x108   : > { %877 = vst.msk [vmem:[%s2596_s12 + $0x28] sm:$0xf] %vm866_vm2, %v1923_v21  ;;  %v743_v25 = vpack.c.bf16 %v2061_v24, %v2060_v20  ;;  %v1924_v26 = vpack.c.bf16 %v2061_v24, %v2061_v24  ;;  %v646_v27 = vpop.f32.mrb[11].mxu0 }
 0x109   : > { %875 = vst.msk [vmem:[%s2596_s12 + $0x20] sm:$0xf] %vm866_vm2, %v1921_v23  ;;  %v742_v28 = vpack.c.bf16 %v646_v27, %v643_v22  ;;  %v1922_v29 = vpack.c.bf16 %v646_v27, %v646_v27 }
 0x10a   : > { %878 = vst.msk [vmem:[%s2596_s12 + $0x2c] sm:$0xf] %vm866_vm2, %v1924_v26 }
 0x10b   : > { %1891 = vmatmul.mubr.msk.bf16.gmra.mrb[28].mxu1 %vm1039_vm1, %v740_v18  ;;  %876 = vst.msk [vmem:[%s2596_s12 + $0x24] sm:$0xf] %vm866_vm2, %v1922_v29 }
 0x10c   : > { %1411 = vmatprep.mubr.bf16.mxu1 %v2319_v5 }
 0x10d   : > { %v2628_v30 = vpop.f32.mrb[12].mxu0 }
 0x10e   : > { %v1927_v31 = vpack.c.bf16 %v2628_v30, %v2628_v30  ;;  %v659_v32 = vpop.f32.mrb[13].mxu0 }
 0x10f   : > { %v1925_v33 = vpack.c.bf16 %v659_v32, %v659_v32  ;;  %v2632_v34 = vpop.f32.mrb[14].mxu0 }
 0x110   : > { %881 = vst.msk [vmem:[%s2596_s12 + $0x38] sm:$0xf] %vm866_vm2, %v1927_v31  ;;  %v745_v35 = vpack.c.bf16 %v2632_v34, %v2628_v30  ;;  %v1928_v36 = vpack.c.bf16 %v2632_v34, %v2632_v34  ;;  %v662_v37 = vpop.f32.mrb[15].mxu0 }
 0x111   : > { %879 = vst.msk [vmem:[%s2596_s12 + $0x30] sm:$0xf] %vm866_vm2, %v1925_v33  ;;  %v744_v38 = vpack.c.bf16 %v662_v37, %v659_v32  ;;  %v1926_v39 = vpack.c.bf16 %v662_v37, %v662_v37 }
 0x112   : > { %882 = vst.msk [vmem:[%s2596_s12 + $0x3c] sm:$0xf] %vm866_vm2, %v1928_v36 }
 0x113   : > { %1892 = vmatmul.mubr.msk.bf16.gmra.mrb[32].mxu1 %vm1039_vm1, %v741_v15  ;;  %880 = vst.msk [vmem:[%s2596_s12 + $0x34] sm:$0xf] %vm866_vm2, %v1926_v39 }
 0x114   : > { %1421 = vmatprep.mubr.bf16.mxu1 %v2319_v5 }
 0x115   : > { %v2648_v40 = vpop.f32.mrb[16].mxu0 }
 0x116   : > { %v1931_v41 = vpack.c.bf16 %v2648_v40, %v2648_v40  ;;  %v2652_v42 = vpop.f32.mrb[17].mxu0 }
 0x117   : > { %v1929_v43 = vpack.c.bf16 %v2652_v42, %v2652_v42  ;;  %v2656_v44 = vpop.f32.mrb[18].mxu0 }
 0x118   : > { %885 = vst.msk [vmem:[%s2596_s12 + $0x48] sm:$0xf] %vm866_vm2, %v1931_v41  ;;  %v747_v45 = vpack.c.bf16 %v2656_v44, %v2648_v40  ;;  %v1932_v46 = vpack.c.bf16 %v2656_v44, %v2656_v44  ;;  %v678_v47 = vpop.f32.mrb[19].mxu0 }
 0x119   : > { %883 = vst.msk [vmem:[%s2596_s12 + $0x40] sm:$0xf] %vm866_vm2, %v1929_v43  ;;  %v746_v48 = vpack.c.bf16 %v678_v47, %v2652_v42  ;;  %v1930_v49 = vpack.c.bf16 %v678_v47, %v678_v47 }
 0x11a   : > { %886 = vst.msk [vmem:[%s2596_s12 + $0x4c] sm:$0xf] %vm866_vm2, %v1932_v46 }
 0x11b   : > { %1893 = vmatmul.mubr.msk.bf16.gmra.mrb[36].mxu1 %vm1039_vm1, %v742_v28  ;;  %884 = vst.msk [vmem:[%s2596_s12 + $0x44] sm:$0xf] %vm866_vm2, %v1930_v49 }
 0x11c   : > { %1431 = vmatprep.mubr.bf16.mxu1 %v2319_v5 }
 0x11d   : > { %v2072_v50 = vpop.f32.mrb[20].mxu0 }
 0x11e   : > { %v1935_v51 = vpack.c.bf16 %v2072_v50, %v2072_v50  ;;  %v691_v52 = vpop.f32.mrb[21].mxu0 }
 0x11f   : > { %v1933_v53 = vpack.c.bf16 %v691_v52, %v691_v52  ;;  %v2073_v6 = vpop.f32.mrb[22].mxu0 }
 0x120   : > { %889 = vst.msk [vmem:[%s2596_s12 + $0x58] sm:$0xf] %vm866_vm2, %v1935_v51  ;;  %v749_v54 = vpack.c.bf16 %v2073_v6, %v2072_v50  ;;  %v1936_v55 = vpack.c.bf16 %v2073_v6, %v2073_v6  ;;  %v694_v56 = vpop.f32.mrb[23].mxu0 }
 0x121   : > { %887 = vst.msk [vmem:[%s2596_s12 + $0x50] sm:$0xf] %vm866_vm2, %v1933_v53  ;;  %v748_v57 = vpack.c.bf16 %v694_v56, %v691_v52  ;;  %v1934_v58 = vpack.c.bf16 %v694_v56, %v694_v56 }
 0x122   : > { %890 = vst.msk [vmem:[%s2596_s12 + $0x5c] sm:$0xf] %vm866_vm2, %v1936_v55 }
 0x123   : > { %1894 = vmatmul.mubr.msk.bf16.gmra.mrb[40].mxu1 %vm1039_vm1, %v743_v25  ;;  %888 = vst.msk [vmem:[%s2596_s12 + $0x54] sm:$0xf] %vm866_vm2, %v1934_v58 }
 0x124   : > { %1441 = vmatprep.mubr.bf16.mxu1 %v2319_v5 }
 0x125   : > { %v2076_v59 = vpop.f32.mrb[24].mxu0 }
 0x126   : > { %v1939_v60 = vpack.c.bf16 %v2076_v59, %v2076_v59  ;;  %v707_v61 = vpop.f32.mrb[25].mxu0 }
 0x127   : > { %v1937_v62 = vpack.c.bf16 %v707_v61, %v707_v61  ;;  %v2077_v63 = vpop.f32.mrb[26].mxu0 }
 0x128   : > { %893 = vst.msk [vmem:[%s2596_s12 + $0x68] sm:$0xf] %vm866_vm2, %v1939_v60  ;;  %v751_v0 = vpack.c.bf16 %v2077_v63, %v2076_v59  ;;  %v1940_v1 = vpack.c.bf16 %v2077_v63, %v2077_v63  ;;  %v710_v2 = vpop.f32.mrb[27].mxu0 }
 0x129   : > { %891 = vst.msk [vmem:[%s2596_s12 + $0x60] sm:$0xf] %vm866_vm2, %v1937_v62  ;;  %v750_v3 = vpack.c.bf16 %v710_v2, %v707_v61  ;;  %v1938_v4 = vpack.c.bf16 %v710_v2, %v710_v2 }
 0x12a   : > { %894 = vst.msk [vmem:[%s2596_s12 + $0x6c] sm:$0xf] %vm866_vm2, %v1940_v1 }
 0x12b   : > { %1895 = vmatmul.mubr.msk.bf16.gmra.mrb[44].mxu1 %vm1039_vm1, %v744_v38  ;;  %892 = vst.msk [vmem:[%s2596_s12 + $0x64] sm:$0xf] %vm866_vm2, %v1938_v4 }
 0x12c   : > { %1451 = vmatprep.mubr.bf16.mxu1 %v2319_v5 }
 0x12d   : > { %v2080_v7 = vpop.f32.mrb[28].mxu0 }
 0x12e   : > { %v1943_v8 = vpack.c.bf16 %v2080_v7, %v2080_v7  ;;  %v723_v9 = vpop.f32.mrb[29].mxu0 }
 0x12f   : > { %v1941_v10 = vpack.c.bf16 %v723_v9, %v723_v9  ;;  %v2081_v11 = vpop.f32.mrb[30].mxu0 }
 0x130   : > { %897 = vst.msk [vmem:[%s2596_s12 + $0x78] sm:$0xf] %vm866_vm2, %v1943_v8  ;;  %v753_v12 = vpack.c.bf16 %v2081_v11, %v2080_v7  ;;  %v1944_v13 = vpack.c.bf16 %v2081_v11, %v2081_v11  ;;  %v726_v14 = vpop.f32.mrb[31].mxu0 }
 0x131   : > { %895 = vst.msk [vmem:[%s2596_s12 + $0x70] sm:$0xf] %vm866_vm2, %v1941_v10  ;;  %v752_v15 = vpack.c.bf16 %v726_v14, %v723_v9  ;;  %v1942_v16 = vpack.c.bf16 %v726_v14, %v726_v14 }
 0x132   : > { %898 = vst.msk [vmem:[%s2596_s12 + $0x7c] sm:$0xf] %vm866_vm2, %v1944_v13 }
 0x133   : > { %1896 = vmatmul.mubr.msk.bf16.gmra.mrb[48].mxu1 %vm1039_vm1, %v745_v35  ;;  %896 = vst.msk [vmem:[%s2596_s12 + $0x74] sm:$0xf] %vm866_vm2, %v1942_v16 }
 0x134   : > { %1461 = vmatprep.mubr.bf16.mxu1 %v2319_v5 }
 0x135   : > { %v2712_v17 = vpop.f32.mrb[32].mxu0 }
 0x136   : > { %v2714_v18 = vpop.f32.mrb[33].mxu0 }
 0x137   : > { %v2716_v19 = vpop.f32.mrb[34].mxu0 }
 0x138   : > { %v2718_v20 = vpop.f32.mrb[35].mxu0 }
 0x13b   : > { %1897 = vmatmul.mubr.msk.bf16.gmra.mrb[52].mxu1 %vm1039_vm1, %v746_v48 }
 0x13c   : > { %1471 = vmatprep.mubr.bf16.mxu1 %v2319_v5 }
 0x13d   : > { %v2722_v21 = vpop.f32.mrb[36].mxu0 }
 0x13e   : > { %v2724_v22 = vpop.f32.mrb[37].mxu0 }
 0x13f   : > { %v2726_v23 = vpop.f32.mrb[38].mxu0 }
 0x140   : > { %v2728_v24 = vpop.f32.mrb[39].mxu0 }
 0x143   : > { %1898 = vmatmul.mubr.msk.bf16.gmra.mrb[56].mxu1 %vm1039_vm1, %v747_v45 }
 0x144   : > { %1481 = vmatprep.mubr.bf16.mxu1 %v2319_v5 }
 0x145   : > { %v2732_v25 = vpop.f32.mrb[40].mxu0 }
 0x146   : > { %v2734_v26 = vpop.f32.mrb[41].mxu0 }
 0x147   : > { %v2736_v27 = vpop.f32.mrb[42].mxu0 }
 0x148   : > { %v2738_v28 = vpop.f32.mrb[43].mxu0 }
 0x14b   : > { %1899 = vmatmul.mubr.msk.bf16.gmra.mrb[60].mxu1 %vm1039_vm1, %v748_v57 }
 0x14c   : > { %1491 = vmatprep.mubr.bf16.mxu1 %v2319_v5 }
 0x14d   : > { %v2742_v29 = vpop.f32.mrb[44].mxu0 }
 0x14e   : > { %v2744_v30 = vpop.f32.mrb[45].mxu0 }
 0x14f   : > { %v2746_v31 = vpop.f32.mrb[46].mxu0 }
 0x150   : > { %v2748_v32 = vpop.f32.mrb[47].mxu0 }
 0x153   : > { %1900 = vmatmul.mubr.msk.bf16.gmra.mrb[0].mxu1 %vm1039_vm1, %v749_v54 }
 0x154   : > { %1501 = vmatprep.mubr.bf16.mxu1 %v2319_v5 }
 0x155   : > { %v2752_v33 = vpop.f32.mrb[48].mxu0 }
 0x156   : > { %v2754_v34 = vpop.f32.mrb[49].mxu0 }
 0x157   : > { %v2756_v35 = vpop.f32.mrb[50].mxu0 }
 0x158   : > { %v2758_v36 = vpop.f32.mrb[51].mxu0 }
 0x15b   : > { %1901 = vmatmul.mubr.msk.bf16.gmra.mrb[4].mxu1 %vm1039_vm1, %v750_v3 }
 0x15c   : > { %1511 = vmatprep.mubr.bf16.mxu1 %v2319_v5 }
 0x15d   : > { %v2761_v37 = vpop.f32.mrb[52].mxu0 }
 0x15e   : > { %v2763_v38 = vpop.f32.mrb[53].mxu0 }
 0x15f   : > { %v2765_v39 = vpop.f32.mrb[54].mxu0 }
 0x160   : > { %v2767_v40 = vpop.f32.mrb[55].mxu0 }
 0x163   : > { %1902 = vmatmul.mubr.msk.bf16.gmra.mrb[8].mxu1 %vm1039_vm1, %v751_v0 }
 0x164   : > { %1521 = vmatprep.mubr.bf16.mxu1 %v2319_v5 }
 0x165   : > { %v2769_v41 = vpop.f32.mrb[56].mxu0 }
 0x16b   : > { %1903 = vmatmul.mubr.msk.bf16.gmra.mrb[12].mxu1 %vm1039_vm1, %v752_v15 }
 0x16c   : > { %1531 = vmatprep.mubr.bf16.mxu1 %v2319_v5  ;;  %v2771_v5 = vpop.f32.mrb[57].mxu0 }
 0x16d   : > { %v2773_v42 = vpop.f32.mrb[58].mxu0 }
 0x16e   : > { %v2775_v43 = vpop.f32.mrb[59].mxu0 }
 0x16f   : > { %v2777_v44 = vpop.f32.mrb[60].mxu0 }
 0x170   : > { %v2779_v45 = vpop.f32.mrb[61].mxu0 }
 0x171   : > { %v2781_v46 = vpop.f32.mrb[62].mxu0 }
 0x172   : > { %v2783_v47 = vpop.f32.mrb[63].mxu0 }
 0x173   : > { %1904 = vmatmul.mubr.msk.bf16.gmra.mrb[16].mxu1 %vm1039_vm1, %v753_v12 }
 0x175   : > { %v2785_v48 = vpop.f32.mrb[64].mxu0 }
 0x176   : > { %v2787_v49 = vpop.f32.mrb[65].mxu0 }
 0x177   : > { %v2789_v50 = vpop.f32.mrb[66].mxu0 }
 0x178   : > { %v2791_v51 = vpop.f32.mrb[67].mxu0 }
 0x17d   : > { %v2793_v52 = vpop.f32.mrb[68].mxu0 }
 0x17e   : > { %v2795_v53 = vpop.f32.mrb[69].mxu0 }
 0x17f   : > { %v2797_v6 = vpop.f32.mrb[70].mxu0 }
 0x180   : > { %v2799_v54 = vpop.f32.mrb[71].mxu0 }
 0x185   : > { %v2801_v55 = vpop.f32.mrb[72].mxu0 }
 0x186   : > { %v2803_v56 = vpop.f32.mrb[73].mxu0 }
 0x187   : > { %v2805_v57 = vpop.f32.mrb[74].mxu0 }
 0x188   : > { %v2807_v58 = vpop.f32.mrb[75].mxu0 }
 0x189   : > { %2252 = shalt.err (!%p2249_p5)
}
 0x18a   : > { %s2253_s19 = scalar_lea.hbm %s2814_s18, 2048  ;;  %s2257_s30 = scalar_lea.hbm %s3020_s6, 4096 }
 0x18b   : > { %p2254_p6 = scmp.ne.s32.totalorder %s2814_s18, %s2253_s19  ;;  %p2258_p10 = scmp.lt.u32.totalorder %s2814_s18, %s3020_s6 }
 0x18c   : > { %p2259_p11 = scmp.lt.u32.totalorder %s2257_s30, %s2253_s19  ;;  %p2261_p13 = scmp.lt.u32.totalorder %s2253_s19, %s2814_s18 }
 0x18d   : > { %p2255_p7 = pnand %p2254_p6, %p2403_p4 }
 0x18e   : > { %p2260_p12 = por %p2259_p11, %p2258_p10 }
 0x18f   : > { %p2256_p9 = pneg %p2255_p7 }
 0x190   : > { %p2262_p0 = por %p2261_p13, %p2260_p12 }
 0x192   : > { %p2263_p1 = pnand %p2262_p0, %p2256_p9 }
 0x194   : > { %2266 = shalt.err (!%p2263_p1)
}
 0x195   : > { %s2321_s23 = smov 64   ;;  %s2322_s8 = smov 4   ;;  %vm1543_vm3 = vcmask 130048  }
 0x196   : > { %2150 = dma.vmem_to_hbm [thread:$0]  (%p2403_p4), %s2816_s16, 2048, %s2814_s18, %s2821_s22, %s2321_s23, %s2321_s23, %s2322_s8  }
 0x197   : > { %s2850_s15 = scalar_lea.vmem %s3021_s7, %s1912_s20 }
 0x1ce   : > { %v1383_v59 = vpop.f32.mrb[20].mxu1 }
 0x1cf   : > { %v1384_v60 = vadd.f32 %v1383_v59, %v2712_v17  ;;  %v1385_v61 = vpop.f32.mrb[21].mxu1 }
 0x1d0   : > { %v1386_v62 = vadd.f32 %v1385_v61, %v2714_v18  ;;  %v1387_v63 = vpop.f32.mrb[22].mxu1 }
 0x1d1   : > { %1542 = vst [vmem:[%s2850_s15] sm:$0xff] %v1384_v60  ;;  %v1388_v0 = vadd.f32 %v1387_v63, %v2716_v19  ;;  %v1389_v1 = vpop.f32.mrb[23].mxu1 }
 0x1d2   : > { %1544 = vst.msk [vmem:[%s2850_s15 + $0x8] sm:$0xff] %vm1543_vm3, %v1386_v62  ;;  %v1390_v2 = vadd.f32 %v1389_v1, %v2718_v20 }
 0x1d3   : > { %1545 = vst [vmem:[%s2850_s15 + $0x10] sm:$0xff] %v1388_v0 }
 0x1d4   : > { %1546 = vst.msk [vmem:[%s2850_s15 + $0x18] sm:$0xff] %vm1543_vm3, %v1390_v2 }
 0x1d6   : > { %v1393_v3 = vpop.f32.mrb[24].mxu1 }
 0x1d7   : > { %v1394_v4 = vadd.f32 %v1393_v3, %v2722_v21  ;;  %v1395_v7 = vpop.f32.mrb[25].mxu1 }
 0x1d8   : > { %v1396_v8 = vadd.f32 %v1395_v7, %v2724_v22  ;;  %v1397_v9 = vpop.f32.mrb[26].mxu1 }
 0x1d9   : > { %1547 = vst [vmem:[%s2850_s15 + $0x20] sm:$0xff] %v1394_v4  ;;  %v1398_v10 = vadd.f32 %v1397_v9, %v2726_v23  ;;  %v1399_v11 = vpop.f32.mrb[27].mxu1 }
 0x1da   : > { %1548 = vst.msk [vmem:[%s2850_s15 + $0x28] sm:$0xff] %vm1543_vm3, %v1396_v8  ;;  %v1400_v12 = vadd.f32 %v1399_v11, %v2728_v24 }
 0x1db   : > { %1549 = vst [vmem:[%s2850_s15 + $0x30] sm:$0xff] %v1398_v10 }
 0x1dc   : > { %1550 = vst.msk [vmem:[%s2850_s15 + $0x38] sm:$0xff] %vm1543_vm3, %v1400_v12 }
 0x1de   : > { %v1403_v13 = vpop.f32.mrb[28].mxu1 }
 0x1df   : > { %v1404_v14 = vadd.f32 %v1403_v13, %v2732_v25  ;;  %v1405_v15 = vpop.f32.mrb[29].mxu1 }
 0x1e0   : > { %v1406_v16 = vadd.f32 %v1405_v15, %v2734_v26  ;;  %v1407_v17 = vpop.f32.mrb[30].mxu1 }
 0x1e1   : > { %1551 = vst [vmem:[%s2850_s15 + $0x40] sm:$0xff] %v1404_v14  ;;  %v1408_v18 = vadd.f32 %v1407_v17, %v2736_v27  ;;  %v1409_v19 = vpop.f32.mrb[31].mxu1 }
 0x1e2   : > { %1552 = vst.msk [vmem:[%s2850_s15 + $0x48] sm:$0xff] %vm1543_vm3, %v1406_v16  ;;  %v1410_v20 = vadd.f32 %v1409_v19, %v2738_v28 }
 0x1e3   : > { %1553 = vst [vmem:[%s2850_s15 + $0x50] sm:$0xff] %v1408_v18 }
 0x1e4   : > { %1554 = vst.msk [vmem:[%s2850_s15 + $0x58] sm:$0xff] %vm1543_vm3, %v1410_v20 }
 0x1e6   : > { %v1413_v21 = vpop.f32.mrb[32].mxu1 }
 0x1e7   : > { %v1414_v22 = vadd.f32 %v1413_v21, %v2742_v29  ;;  %v1415_v23 = vpop.f32.mrb[33].mxu1 }
 0x1e8   : > { %v1416_v24 = vadd.f32 %v1415_v23, %v2744_v30  ;;  %v1417_v25 = vpop.f32.mrb[34].mxu1 }
 0x1e9   : > { %1555 = vst [vmem:[%s2850_s15 + $0x60] sm:$0xff] %v1414_v22  ;;  %v1418_v26 = vadd.f32 %v1417_v25, %v2746_v31  ;;  %v1419_v27 = vpop.f32.mrb[35].mxu1 }
 0x1ea   : > { %1556 = vst.msk [vmem:[%s2850_s15 + $0x68] sm:$0xff] %vm1543_vm3, %v1416_v24  ;;  %v1420_v28 = vadd.f32 %v1419_v27, %v2748_v32 }
 0x1eb   : > { %1557 = vst [vmem:[%s2850_s15 + $0x70] sm:$0xff] %v1418_v26 }
 0x1ec   : > { %1558 = vst.msk [vmem:[%s2850_s15 + $0x78] sm:$0xff] %vm1543_vm3, %v1420_v28 }
 0x1ee   : > { %v1423_v29 = vpop.f32.mrb[36].mxu1 }
 0x1ef   : > { %v1424_v59 = vadd.f32 %v1423_v29, %v2752_v33  ;;  %v1425_v30 = vpop.f32.mrb[37].mxu1 }
 0x1f0   : > { %v1426_v60 = vadd.f32 %v1425_v30, %v2754_v34  ;;  %v1427_v61 = vpop.f32.mrb[38].mxu1 }
 0x1f1   : > { %1559 = vst [vmem:[%s2850_s15 + $0x80] sm:$0xff] %v1424_v59  ;;  %v1428_v31 = vadd.f32 %v1427_v61, %v2756_v35  ;;  %v1429_v62 = vpop.f32.mrb[39].mxu1 }
 0x1f2   : > { %1560 = vst.msk [vmem:[%s2850_s15 + $0x88] sm:$0xff] %vm1543_vm3, %v1426_v60  ;;  %v1430_v32 = vadd.f32 %v1429_v62, %v2758_v36 }
 0x1f3   : > { %1561 = vst [vmem:[%s2850_s15 + $0x90] sm:$0xff] %v1428_v31 }
 0x1f4   : > { %1562 = vst.msk [vmem:[%s2850_s15 + $0x98] sm:$0xff] %vm1543_vm3, %v1430_v32 }
 0x1f6   : > { %v1433_v33 = vpop.f32.mrb[40].mxu1 }
 0x1f7   : > { %v1434_v63 = vadd.f32 %v1433_v33, %v2761_v37  ;;  %v1435_v34 = vpop.f32.mrb[41].mxu1 }
 0x1f8   : > { %v1436_v0 = vadd.f32 %v1435_v34, %v2763_v38  ;;  %v1437_v1 = vpop.f32.mrb[42].mxu1 }
 0x1f9   : > { %1563 = vst [vmem:[%s2850_s15 + $0xa0] sm:$0xff] %v1434_v63  ;;  %v1438_v35 = vadd.f32 %v1437_v1, %v2765_v39  ;;  %v1439_v2 = vpop.f32.mrb[43].mxu1 }
 0x1fa   : > { %1564 = vst.msk [vmem:[%s2850_s15 + $0xa8] sm:$0xff] %vm1543_vm3, %v1436_v0  ;;  %v1440_v36 = vadd.f32 %v1439_v2, %v2767_v40 }
 0x1fb   : > { %1565 = vst [vmem:[%s2850_s15 + $0xb0] sm:$0xff] %v1438_v35 }
 0x1fc   : > { %1566 = vst.msk [vmem:[%s2850_s15 + $0xb8] sm:$0xff] %vm1543_vm3, %v1440_v36 }
 0x1fe   : > { %v1443_v37 = vpop.f32.mrb[44].mxu1 }
 0x1ff   : > { %v1444_v3 = vadd.f32 %v1443_v37, %v2769_v41  ;;  %v1445_v38 = vpop.f32.mrb[45].mxu1 }
 0x200   : > { %v1446_v4 = vadd.f32 %v1445_v38, %v2771_v5  ;;  %v1447_v7 = vpop.f32.mrb[46].mxu1 }
 0x201   : > { %1567 = vst [vmem:[%s2850_s15 + $0xc0] sm:$0xff] %v1444_v3  ;;  %v1448_v39 = vadd.f32 %v1447_v7, %v2773_v42  ;;  %v1449_v8 = vpop.f32.mrb[47].mxu1 }
 0x202   : > { %1568 = vst.msk [vmem:[%s2850_s15 + $0xc8] sm:$0xff] %vm1543_vm3, %v1446_v4  ;;  %v1450_v40 = vadd.f32 %v1449_v8, %v2775_v43 }
 0x203   : > { %1569 = vst [vmem:[%s2850_s15 + $0xd0] sm:$0xff] %v1448_v39 }
 0x204   : > { %1570 = vst.msk [vmem:[%s2850_s15 + $0xd8] sm:$0xff] %vm1543_vm3, %v1450_v40 }
 0x206   : > { %v1453_v41 = vpop.f32.mrb[48].mxu1 }
 0x207   : > { %v1454_v9 = vadd.f32 %v1453_v41, %v2777_v44  ;;  %v1455_v5 = vpop.f32.mrb[49].mxu1 }
 0x208   : > { %v1456_v10 = vadd.f32 %v1455_v5, %v2779_v45  ;;  %v1457_v11 = vpop.f32.mrb[50].mxu1 }
 0x209   : > { %1571 = vst [vmem:[%s2850_s15 + $0xe0] sm:$0xff] %v1454_v9  ;;  %v1458_v42 = vadd.f32 %v1457_v11, %v2781_v46  ;;  %v1459_v12 = vpop.f32.mrb[51].mxu1 }
 0x20a   : > { %1572 = vst.msk [vmem:[%s2850_s15 + $0xe8] sm:$0xff] %vm1543_vm3, %v1456_v10  ;;  %v1460_v43 = vadd.f32 %v1459_v12, %v2783_v47 }
 0x20b   : > { %1573 = vst [vmem:[%s2850_s15 + $0xf0] sm:$0xff] %v1458_v42 }
 0x20c   : > { %1574 = vst.msk [vmem:[%s2850_s15 + $0xf8] sm:$0xff] %vm1543_vm3, %v1460_v43 }
 0x20e   : > { %v1463_v44 = vpop.f32.mrb[52].mxu1 }
 0x20f   : > { %v1464_v13 = vadd.f32 %v1463_v44, %v2785_v48  ;;  %v1465_v45 = vpop.f32.mrb[53].mxu1 }
 0x210   : > { %v1466_v14 = vadd.f32 %v1465_v45, %v2787_v49  ;;  %v1467_v15 = vpop.f32.mrb[54].mxu1 }
 0x211   : > { %1575 = vst [vmem:[%s2850_s15 + $0x100] sm:$0xff] %v1464_v13  ;;  %v1468_v46 = vadd.f32 %v1467_v15, %v2789_v50  ;;  %v1469_v16 = vpop.f32.mrb[55].mxu1 }
 0x212   : > { %1576 = vst.msk [vmem:[%s2850_s15 + $0x108] sm:$0xff] %vm1543_vm3, %v1466_v14  ;;  %v1470_v47 = vadd.f32 %v1469_v16, %v2791_v51 }
 0x213   : > { %1577 = vst [vmem:[%s2850_s15 + $0x110] sm:$0xff] %v1468_v46 }
 0x214   : > { %1578 = vst.msk [vmem:[%s2850_s15 + $0x118] sm:$0xff] %vm1543_vm3, %v1470_v47 }
 0x216   : > { %v1473_v48 = vpop.f32.mrb[56].mxu1 }
 0x217   : > { %v1474_v17 = vadd.f32 %v1473_v48, %v2793_v52  ;;  %v1475_v49 = vpop.f32.mrb[57].mxu1 }
 0x218   : > { %v1476_v18 = vadd.f32 %v1475_v49, %v2795_v53  ;;  %v1477_v19 = vpop.f32.mrb[58].mxu1 }
 0x219   : > { %1579 = vst [vmem:[%s2850_s15 + $0x120] sm:$0xff] %v1474_v17  ;;  %v1478_v50 = vadd.f32 %v1477_v19, %v2797_v6  ;;  %v1479_v20 = vpop.f32.mrb[59].mxu1 }
 0x21a   : > { %1580 = vst.msk [vmem:[%s2850_s15 + $0x128] sm:$0xff] %vm1543_vm3, %v1476_v18  ;;  %v1480_v51 = vadd.f32 %v1479_v20, %v2799_v54 }
 0x21b   : > { %1581 = vst [vmem:[%s2850_s15 + $0x130] sm:$0xff] %v1478_v50 }
 0x21c   : > { %1582 = vst.msk [vmem:[%s2850_s15 + $0x138] sm:$0xff] %vm1543_vm3, %v1480_v51 }
 0x21e   : > { %v1483_v52 = vpop.f32.mrb[60].mxu1 }
 0x21f   : > { %v1484_v53 = vadd.f32 %v1483_v52, %v2801_v55  ;;  %v1485_v21 = vpop.f32.mrb[61].mxu1 }
 0x220   : > { %v1486_v22 = vadd.f32 %v1485_v21, %v2803_v56  ;;  %v1487_v6 = vpop.f32.mrb[62].mxu1 }
 0x221   : > { %1583 = vst [vmem:[%s2850_s15 + $0x140] sm:$0xff] %v1484_v53  ;;  %v1488_v23 = vadd.f32 %v1487_v6, %v2805_v57  ;;  %v1489_v24 = vpop.f32.mrb[63].mxu1 }
 0x222   : > { %1584 = vst.msk [vmem:[%s2850_s15 + $0x148] sm:$0xff] %vm1543_vm3, %v1486_v22  ;;  %v1490_v54 = vadd.f32 %v1489_v24, %v2807_v58 }
 0x223   : > { %1585 = vst [vmem:[%s2850_s15 + $0x150] sm:$0xff] %v1488_v23 }
 0x224   : > { %1586 = vst.msk [vmem:[%s2850_s15 + $0x158] sm:$0xff] %vm1543_vm3, %v1490_v54 }
 0x226   : > { %v1493_v55 = vpop.f32.mrb[0].mxu1 }
 0x227   : > { %1587 = vst [vmem:[%s2850_s15 + $0x160] sm:$0xff] %v1493_v55  ;;  %v1495_v56 = vpop.f32.mrb[1].mxu1 }
 0x228   : > { %1588 = vst.msk [vmem:[%s2850_s15 + $0x168] sm:$0xff] %vm1543_vm3, %v1495_v56  ;;  %v1497_v25 = vpop.f32.mrb[2].mxu1 }
 0x229   : > { %1589 = vst [vmem:[%s2850_s15 + $0x170] sm:$0xff] %v1497_v25  ;;  %v1499_v57 = vpop.f32.mrb[3].mxu1 }
 0x22a   : > { %1590 = vst.msk [vmem:[%s2850_s15 + $0x178] sm:$0xff] %vm1543_vm3, %v1499_v57 }
 0x22e   : > { %v1503_v58 = vpop.f32.mrb[4].mxu1 }
 0x22f   : > { %1591 = vst [vmem:[%s2850_s15 + $0x180] sm:$0xff] %v1503_v58  ;;  %v1505_v26 = vpop.f32.mrb[5].mxu1 }
 0x230   : > { %1592 = vst.msk [vmem:[%s2850_s15 + $0x188] sm:$0xff] %vm1543_vm3, %v1505_v26  ;;  %v1507_v27 = vpop.f32.mrb[6].mxu1 }
 0x231   : > { %1593 = vst [vmem:[%s2850_s15 + $0x190] sm:$0xff] %v1507_v27  ;;  %v1509_v28 = vpop.f32.mrb[7].mxu1 }
 0x232   : > { %1594 = vst.msk [vmem:[%s2850_s15 + $0x198] sm:$0xff] %vm1543_vm3, %v1509_v28 }
 0x236   : > { %v1513_v29 = vpop.f32.mrb[8].mxu1 }
 0x237   : > { %1595 = vst [vmem:[%s2850_s15 + $0x1a0] sm:$0xff] %v1513_v29  ;;  %v1515_v59 = vpop.f32.mrb[9].mxu1 }
 0x238   : > { %1596 = vst.msk [vmem:[%s2850_s15 + $0x1a8] sm:$0xff] %vm1543_vm3, %v1515_v59  ;;  %v1517_v30 = vpop.f32.mrb[10].mxu1 }
 0x239   : > { %1597 = vst [vmem:[%s2850_s15 + $0x1b0] sm:$0xff] %v1517_v30  ;;  %v1519_v60 = vpop.f32.mrb[11].mxu1 }
 0x23a   : > { %1598 = vst.msk [vmem:[%s2850_s15 + $0x1b8] sm:$0xff] %vm1543_vm3, %v1519_v60 }
 0x23e   : > { %v1523_v61 = vpop.f32.mrb[12].mxu1 }
 0x23f   : > { %1599 = vst [vmem:[%s2850_s15 + $0x1c0] sm:$0xff] %v1523_v61  ;;  %v1525_v31 = vpop.f32.mrb[13].mxu1 }
 0x240   : > { %1600 = vst.msk [vmem:[%s2850_s15 + $0x1c8] sm:$0xff] %vm1543_vm3, %v1525_v31  ;;  %v1527_v62 = vpop.f32.mrb[14].mxu1 }
 0x241   : > { %1601 = vst [vmem:[%s2850_s15 + $0x1d0] sm:$0xff] %v1527_v62  ;;  %v1529_v32 = vpop.f32.mrb[15].mxu1 }
 0x242   : > { %1602 = vst.msk [vmem:[%s2850_s15 + $0x1d8] sm:$0xff] %vm1543_vm3, %v1529_v32 }
 0x246   : > { %v1533_v33 = vpop.f32.mrb[16].mxu1 }
 0x247   : > { %1603 = vst [vmem:[%s2850_s15 + $0x1e0] sm:$0xff] %v1533_v33  ;;  %v1535_v63 = vpop.f32.mrb[17].mxu1 }
 0x248   : > { %1604 = vst.msk [vmem:[%s2850_s15 + $0x1e8] sm:$0xff] %vm1543_vm3, %v1535_v63  ;;  %v1537_v34 = vpop.f32.mrb[18].mxu1 }
 0x249   : > { %1605 = vst [vmem:[%s2850_s15 + $0x1f0] sm:$0xff] %v1537_v34  ;;  %v1539_v0 = vpop.f32.mrb[19].mxu1 }
 0x24a   : > { %1606 = vst.msk [vmem:[%s2850_s15 + $0x1f8] sm:$0xff] %vm1543_vm3, %v1539_v0 }
 0x24b PF: > { %p2156_p4 = scmp.ge.s32.totalorder %s2317_s29, 2  ;;  %s1652_s11 = sand.u32 1, %s2297_s24  }
 0x24c   : > { %s1653_s21 = scalar_lea.sflag [#allocation3], %s1652_s11 }
 0x24d   : > { %p2153_p2 = pnand %p2156_p4, %p2410_p8 }
 0x24f   : > { %2292 = dma.done.wait (!%p2153_p2), %s1653_s21, 2048  }
 0x250   : > { %2294 = vsyncadd (!%p2153_p2), %s1653_s21, 4294965248  ;;  %s21_s29 = sadd.s32 1, %s2317_s29   ;;  %s3024_s24 = smov %s2301_s25 }
 0x251   : > { %p18_p3 = scmp.ge.s32.totalorder %s21_s29, 4   ;;  %s3025_s25 = smov %s2305_s26 }
 0x252   : > { %s3026_s26 = smov %s2416_s14  ;;  %s3027_s27 = smov %s2313_s28 }
 0x253   : > { %s3028_s28 = smov %s3030_s9  ;;  %20 = sbr.rel (!%p18_p3) target bundleno = 4 (0x4), region = 97 }
 0x25a   :  { %1671 = vsyncpa [#allocation3], 1 }
 0x25b   :  { %1673 = vsyncpa [#allocation3 + $0x1], 1 }

// kernel: _lambda_.3
= control target key start
LH: loop header
LB: loop body
LE: loop exit
PB: predicated region body
PF: predicated region fallthrough
CT: control target
= control target key end

     0   :  { %8 = vsyncpa [#allocation3], 0  ;;  %s2310_s0 = inlined_call_operand.vmem [shape: bf16[2,256,288], index: 0, kind: input, shape index: {}]   ;;  %s2311_s1 = inlined_call_operand.vmem [shape: bf16[2,256,32], index: 1, kind: input, shape index: {}]   ;;  %s2312_s2 = inlined_call_operand.vmem [shape: bf16[288,32], index: 2, kind: input, shape index: {}]   ;;  %s2313_s3 = inlined_call_operand.hbm [shape: f32[2,256,32], index: 3, kind: output, shape index: {}]  }
   0x1   :  { %10 = vsyncpa [#allocation3 + $0x1], 0  ;;  %s1937_s12 = smov 0   ;;  %s1939_s13 = smov 0  }
   0x2   :  { %s1941_s14 = smov 0   ;;  %s1943_s15 = smov 0  }
   0x3   :  { %s1945_s16 = smov 0   ;;  %s1947_s17 = smov 0  }
   0x4 LB: > { %s1335_s18 = sadd.s32 4294967295, %s1912_s17   ;;  %s1336_s19 = sadd.s32 4294967294, %s1912_s17   ;;  %s1912_s17 = sphi %s1947_s17, %s16_s17   ;;  %s1908_s16 = sphi %s1945_s16, %s2320_s16   ;;  %s1904_s15 = sphi %s1943_s15, %s2319_s15   ;;  %s1900_s14 = sphi %s1941_s14, %s2318_s14   ;;  %s1896_s13 = sphi %s1939_s13, %s2317_s13   ;;  %s1892_s12 = sphi %s1937_s12, %s2316_s12  }
   0x5   : > { %s28_s20 = sadd.s32 1, %s1908_s16  ;;  %s114_s21 = sadd.s32 1, %s1900_s14 }
   0x6   : > { %p30_p0 = scmp.ge.s32.totalorder %s28_s20, 2  ;;  %p124_p1 = scmp.ne.s32.totalorder %s1900_s14, %s1896_s13 }
   0x7   : > { %p125_p2 = scmp.eq.s32.totalorder %s1335_s18, 1  ;;  %p130_p3 = scmp.ne.s32.totalorder %s1896_s13, %s1892_s12 }
   0x8   : > { %s2322_s20 = smov (%p30_p0, %s28_s20), 0  ;;  %p131_p5 = scmp.eq.s32.totalorder %s1336_s19, 1 }
   0x9   : > { %p1977_p4 = por %p125_p2, %p124_p1  ;;  %s109_s23 = ssub.s32 %s1908_s16, %s2322_s20 }
   0xa   : > { %p1339_p6 = scmp.ge.s32.totalorder %s1912_s17, 1  ;;  %p112_p7 = scmp.eq.s32.totalorder %s109_s23, 0 }
   0xb   : > { %p1984_p8 = por %p131_p5, %p130_p3  ;;  %p179_p9 = scmp.lt.s32.totalorder %s1912_s17, 3 }
   0xc   : > { %s1990_s25 = scalar_select %p112_p7, %s1900_s14, %s114_s21  }
   0xd   : > { %p180_p10 = pnand %p1339_p6, %p179_p9 }
   0xe   : > { %v1752_v0 = vld [vmem:[%s2312_s2 + $0x40] sm:$0xff] (!%p180_p10)   ;;  %v1754_v2 = vld [vmem:[%s2312_s2 + $0x48] sm:$0xff] (!%p180_p10)   ;;  %p218_p11 = scmp.lt.s32.totalorder (!%p180_p10), %s1904_s15, 1  ;;  %v1756_v4 = vld [vmem:[%s2312_s2 + $0x50] sm:$0xff] (!%p180_p10)   ;;  %vm688_vm0 = vcmask (!%p180_p10), 261120   ;;  %s1914_s30 = smov (!%p180_p10), [#allocation2]  }
   0xf   : > { %183 = sbr.rel (%p180_p10) target bundleno = 373 (0x175), region = 32  ;;  %v1753_v1 = vld [vmem:[%s2312_s2] sm:$0xff] (!%p180_p10)   ;;  %1512 = vmatprep.subr.bf16.mxu0 (!%p180_p10), %v1752_v0  ;;  %1678 = vmatprep.subr.bf16.mxu1 (!%p180_p10), %v1752_v0  ;;  %v1755_v3 = vld [vmem:[%s2312_s2 + $0x8] sm:$0xff] (!%p180_p10)   ;;  %v1757_v5 = vld [vmem:[%s2312_s2 + $0x10] sm:$0xff] (!%p180_p10)   ;;  %s1838_s5 = sshll.u32 (!%p180_p10), %s1914_s30, 4  ;;  %s1839_s5 = int_to_ptr.vmem [resolvable:$false] %s1838_s5 }
  0x10   : > { %1513 = vmatpush3.bf16.msra.mxu0 (!%p180_p10), %v1753_v1  ;;  %1686 = vmatpush3.bf16.msra.mxu1 (!%p180_p10), %v1753_v1  ;;  %v1758_v6 = vld [vmem:[%s2312_s2 + $0x58] sm:$0xff] (!%p180_p10)   ;;  %v1760_v8 = vld [vmem:[%s2312_s2 + $0x60] sm:$0xff] (!%p180_p10)   ;;  %v1762_v10 = vld [vmem:[%s2312_s2 + $0x68] sm:$0xff] (!%p180_p10)   ;;  %s1840_s6 = scalar_lea.vmem (!%p180_p10), %s1839_s5, 8192 }
  0x11   : > { %1514 = vmatprep.subr.bf16.mxu0 (!%p180_p10), %v1754_v2  ;;  %1679 = vmatprep.subr.bf16.mxu1 (!%p180_p10), %v1754_v2  ;;  %v1759_v7 = vld [vmem:[%s2312_s2 + $0x18] sm:$0xff] (!%p180_p10)   ;;  %v1761_v9 = vld [vmem:[%s2312_s2 + $0x20] sm:$0xff] (!%p180_p10)   ;;  %v1763_v13 = vld [vmem:[%s2312_s2 + $0x28] sm:$0xff] (!%p180_p10)  }
  0x12   : > { %v1764_v14 = vld [vmem:[%s2312_s2 + $0x70] sm:$0xff] (!%p180_p10)   ;;  %v1766_v16 = vld [vmem:[%s2312_s2 + $0x78] sm:$0xff] (!%p180_p10)   ;;  %v1774_v18 = vld [vmem:[%s2312_s2 + $0x80] sm:$0xff] (!%p180_p10)  }
  0x13   : > { %v1765_v15 = vld [vmem:[%s2312_s2 + $0x30] sm:$0xff] (!%p180_p10)   ;;  %v1767_v17 = vld [vmem:[%s2312_s2 + $0x38] sm:$0xff] (!%p180_p10)   ;;  %v1787_v23 = vld [vmem:[%s2312_s2 + $0x88] sm:$0xff] (!%p180_p10)  }
  0x14   : > { %1515 = vmatpush3.bf16.msra.mxu0 (!%p180_p10), %v1755_v3  ;;  %1687 = vmatpush3.bf16.msra.mxu1 (!%p180_p10), %v1755_v3 }
  0x15   : > { %1516 = vmatprep.subr.bf16.mxu0 (!%p180_p10), %v1756_v4  ;;  %1680 = vmatprep.subr.bf16.mxu1 (!%p180_p10), %v1756_v4 }
  0x16   : > { %s2009_s9 = scalar_select %p218_p11, %s1904_s15, 1 }
  0x18   : > { %s1694_s21 = smul.u32 384, %s2009_s9  ;;  %1517 = vmatpush3.bf16.msra.mxu0 %v1757_v5  ;;  %1688 = vmatpush3.bf16.msra.mxu1 %v1757_v5 }
  0x19   : > { %1518 = vmatprep.subr.bf16.mxu0 %v1758_v6  ;;  %1681 = vmatprep.subr.bf16.mxu1 %v1758_v6 }
  0x1a   : > { %s2027_s4 = scalar_lea.vmem %s2310_s0, %s1694_s21  ;;  %s1432_s21 = sshll.u32 %s1904_s15, 12 }
  0x1b   : > { %v1770_v11 = vld [vmem:[%s2027_s4 + $0x4] ss:$12 sps:$4 sm:$0xff]   ;;  %v1768_v19 = vld [vmem:[%s2027_s4] ss:$12 sps:$4 sm:$0xff]   ;;  %v1775_v21 = vld [vmem:[%s2027_s4 + $0x1c] ss:$12 sps:$4 sm:$0xff]   ;;  %s2252_s28 = scalar_lea.hbm %s2313_s3, %s1432_s21 }
  0x1c   : > { %1519 = vmatpush3.bf16.msra.mxu0 %v1759_v7  ;;  %1689 = vmatpush3.bf16.msra.mxu1 %v1759_v7  ;;  %v1773_v12 = vld [vmem:[%s2027_s4 + $0x124] ss:$12 sps:$4 sm:$0xff]   ;;  %v1771_v20 = vld [vmem:[%s2027_s4 + $0x120] ss:$12 sps:$4 sm:$0xff]   ;;  %v1777_v22 = vld [vmem:[%s2027_s4 + $0x13c] ss:$12 sps:$4 sm:$0xff]  }
  0x1d   : > { %1520 = vmatprep.subr.bf16.mxu0 %v1760_v8  ;;  %1682 = vmatprep.subr.bf16.mxu1 %v1760_v8  ;;  %v1779_v24 = vld [vmem:[%s2027_s4 + $0x18] ss:$12 sps:$4 sm:$0xff]   ;;  %v1781_v26 = vld [vmem:[%s2027_s4 + $0x34] ss:$12 sps:$4 sm:$0xff]   ;;  %v1785_v28 = vld [vmem:[%s2027_s4 + $0x30] ss:$12 sps:$4 sm:$0xff]  }
  0x1e   : > { %769 = vmatprep.mubr.bf16.mxu0 %v1770_v11  ;;  %865 = vmatprep.mubr.bf16.mxu1 %v1773_v12  ;;  %v1780_v25 = vld [vmem:[%s2027_s4 + $0x138] ss:$12 sps:$4 sm:$0xff]   ;;  %v1783_v27 = vld [vmem:[%s2027_s4 + $0x154] ss:$12 sps:$4 sm:$0xff]   ;;  %v1786_v29 = vld [vmem:[%s2027_s4 + $0x150] ss:$12 sps:$4 sm:$0xff]  }
  0x1f   : > { %v1788_v30 = vld [vmem:[%s2027_s4 + $0x4c] ss:$12 sps:$4 sm:$0xff]   ;;  %v1792_v32 = vld [vmem:[%s2027_s4 + $0x48] ss:$12 sps:$4 sm:$0xff]   ;;  %v1794_v34 = vld [vmem:[%s2027_s4 + $0x64] ss:$12 sps:$4 sm:$0xff]  }
  0x20   : > { %1521 = vmatpush3.bf16.msra.mxu0 %v1761_v9  ;;  %1690 = vmatpush3.bf16.msra.mxu1 %v1761_v9  ;;  %v1790_v31 = vld [vmem:[%s2027_s4 + $0x16c] ss:$12 sps:$4 sm:$0xff]   ;;  %v1793_v33 = vld [vmem:[%s2027_s4 + $0x168] ss:$12 sps:$4 sm:$0xff]   ;;  %v1803_v41 = vld [vmem:[%s2027_s4 + $0x50] ss:$12 sps:$4 sm:$0xff]  }
  0x21   : > { %1522 = vmatprep.subr.bf16.mxu0 %v1762_v10  ;;  %1683 = vmatprep.subr.bf16.mxu1 %v1762_v10  ;;  %v1796_v35 = vld [vmem:[%s2027_s4 + $0x8] ss:$12 sps:$4 sm:$0xff]   ;;  %v1797_v36 = vld [vmem:[%s2027_s4 + $0x60] ss:$12 sps:$4 sm:$0xff]   ;;  %v1801_v39 = vld [vmem:[%s2027_s4 + $0x38] ss:$12 sps:$4 sm:$0xff]  }
  0x22   : > { %v1798_v37 = vld [vmem:[%s2027_s4 + $0x20] ss:$12 sps:$4 sm:$0xff]   ;;  %v1799_v38 = vld [vmem:[%s2027_s4 + $0x7c] ss:$12 sps:$4 sm:$0xff]   ;;  %v1802_v40 = vld [vmem:[%s2027_s4 + $0x78] ss:$12 sps:$4 sm:$0xff]  }
  0x23   : > { %v1804_v42 = vld [vmem:[%s2027_s4 + $0x94] ss:$12 sps:$4 sm:$0xff]   ;;  %v1807_v44 = vld [vmem:[%s2027_s4 + $0x90] ss:$12 sps:$4 sm:$0xff]   ;;  %v1809_v46 = vld [vmem:[%s2027_s4 + $0xac] ss:$12 sps:$4 sm:$0xff]  }
  0x24   : > { %1523 = vmatpush3.bf16.msra.mxu0 %v1763_v13  ;;  %1691 = vmatpush3.bf16.msra.mxu1 %v1763_v13  ;;  %v1806_v43 = vld [vmem:[%s2027_s4 + $0x68] ss:$12 sps:$4 sm:$0xff]   ;;  %v1808_v45 = vld [vmem:[%s2027_s4 + $0x80] ss:$12 sps:$4 sm:$0xff]   ;;  %v1811_v47 = vld [vmem:[%s2027_s4 + $0x98] ss:$12 sps:$4 sm:$0xff]  }
  0x25   : > { %1524 = vmatprep.subr.bf16.mxu0 %v1764_v14  ;;  %1684 = vmatprep.subr.bf16.mxu1 %v1764_v14  ;;  %v1812_v48 = vld [vmem:[%s2027_s4 + $0xa8] ss:$12 sps:$4 sm:$0xff]   ;;  %v1813_v49 = vld [vmem:[%s2027_s4 + $0xb0] ss:$12 sps:$4 sm:$0xff]   ;;  %v1817_v52 = vld [vmem:[%s2027_s4 + $0xc0] ss:$12 sps:$4 sm:$0xff]  }
  0x26   : > { %v1814_v50 = vld [vmem:[%s2027_s4 + $0xc4] ss:$12 sps:$4 sm:$0xff]   ;;  %v1816_v51 = vld [vmem:[%s2027_s4 + $0xc8] ss:$12 sps:$4 sm:$0xff]   ;;  %v1818_v53 = vld [vmem:[%s2027_s4 + $0xe0] ss:$12 sps:$4 sm:$0xff]  }
  0x27   : > { %v1819_v54 = vld [vmem:[%s2027_s4 + $0xdc] ss:$12 sps:$4 sm:$0xff]   ;;  %v1821_v55 = vld [vmem:[%s2027_s4 + $0xf8] ss:$12 sps:$4 sm:$0xff]   ;;  %v1824_v58 = vld [vmem:[%s2027_s4 + $0xf4] ss:$12 sps:$4 sm:$0xff]  }
  0x28   : > { %1525 = vmatpush3.bf16.msra.mxu0 %v1765_v15  ;;  %1692 = vmatpush3.bf16.msra.mxu1 %v1765_v15  ;;  %v1822_v56 = vld [vmem:[%s2027_s4 + $0xd8] ss:$12 sps:$4 sm:$0xff]   ;;  %v1823_v57 = vld [vmem:[%s2027_s4 + $0x110] ss:$12 sps:$4 sm:$0xff]   ;;  %v1826_v59 = vld [vmem:[%s2027_s4 + $0x128] ss:$12 sps:$4 sm:$0xff]  }
  0x29   : > { %1526 = vmatprep.subr.bf16.mxu0 %v1766_v16  ;;  %1685 = vmatprep.subr.bf16.mxu1 %v1766_v16  ;;  %v1827_v60 = vld [vmem:[%s2027_s4 + $0xf0] ss:$12 sps:$4 sm:$0xff]   ;;  %v1828_v61 = vld [vmem:[%s2027_s4 + $0x140] ss:$12 sps:$4 sm:$0xff]   ;;  %v1831_v63 = vld [vmem:[%s2027_s4 + $0x158] ss:$12 sps:$4 sm:$0xff]  }
  0x2a   : > { %v1829_v62 = vld [vmem:[%s2027_s4 + $0x10c] ss:$12 sps:$4 sm:$0xff]   ;;  %v1832_v0 = vld [vmem:[%s2027_s4 + $0x108] ss:$12 sps:$4 sm:$0xff]   ;;  %v1833_v1 = vld [vmem:[%s2027_s4 + $0x170] ss:$12 sps:$4 sm:$0xff]  }
  0x2b   : > { %s1431_s4 = sshll.u32 %s2009_s9, 7  ;;  %s214_s9 = sand.u32 1, %s1896_s13  }
  0x2c   : > { %1527 = vmatpush3.bf16.msra.mxu0 %v1767_v17  ;;  %1693 = vmatpush3.bf16.msra.mxu1 %v1767_v17  ;;  %s2142_s11 = scalar_lea.vmem %s2311_s1, %s1431_s4  ;;  %s1340_s18 = sshll.u32 %s214_s9, 8 }
  0x2d   : > { %1642 = vmatprep.subr.bf16.mxu1 %v1774_v18  ;;  %s2156_s19 = scalar_lea.vmem [#allocation2], %s1340_s18  ;;  %s2264_s15 = scalar_lea.sflag [#allocation3], %s214_s9 }
  0x2e   : > { %s1235_s23 = sshll.u32 %s2156_s19, 4  ;;  %s2254_s23 = int_to_ptr.vmem [resolvable:$true] %s1235_s23 }
  0x2f   : > { %770 = vmatmul.mubr.bf16.vlgmr.msra.gmra.mrb[0].mxu0 %v1768_v19  ;;  %866 = vmatmul.mubr.bf16.vlgmr.msra.gmra.mrb[0].mxu1 %v1771_v20  ;;  %s1834_s29 = scalar_lea.vmem %s2254_s23, 4096  ;;  %p1841_p1 = scmp.lt.s32.totalorder %s2254_s23, %s1839_s5 }
  0x30   : > { %1643 = vmatpush3.bf16.msra.mxu1 %v1774_v18  ;;  %777 = vmatprep.mubr.bf16.mxu0 %v1775_v21  ;;  %p1835_p12 = scmp.ne.s32.totalorder %s2254_s23, %s1834_s29  ;;  %p1842_p2 = scmp.lt.s32.totalorder %s1840_s6, %s1834_s29 }
  0x31   : > { %873 = vmatprep.mubr.bf16.mxu1 %v1777_v22  ;;  %1644 = vmatprep.subr.bf16.mxu1 %v1787_v23 }
  0x32   : > { %p1836_p13 = pnand %p1835_p12, %p1977_p4  ;;  %p1843_p3 = por %p1842_p2, %p1841_p1 }
  0x34   : > { %1645 = vmatpush3.bf16.msra.mxu1 %v1787_v23  ;;  %p1837_p0 = pneg %p1836_p13 }
  0x36   : > { %p1844_p5 = pnand %p1843_p3, %p1837_p0 }
  0x37   : > { %778 = vmatmul.mubr.bf16.gmra.mrb[4].mxu0 %v1779_v24  ;;  %874 = vmatmul.mubr.bf16.gmra.mrb[4].mxu1 %v1780_v25 }
  0x38   : > { %785 = vmatprep.mubr.bf16.mxu0 %v1781_v26  ;;  %881 = vmatprep.mubr.bf16.mxu1 %v1783_v27 }
  0x3f   : > { %786 = vmatmul.mubr.bf16.gmra.mrb[8].mxu0 %v1785_v28  ;;  %882 = vmatmul.mubr.bf16.gmra.mrb[8].mxu1 %v1786_v29 }
  0x40   : > { %793 = vmatprep.mubr.bf16.mxu0 %v1788_v30  ;;  %889 = vmatprep.mubr.bf16.mxu1 %v1790_v31 }
  0x47   : > { %794 = vmatmul.mubr.bf16.gmra.mrb[12].mxu0 %v1792_v32  ;;  %890 = vmatmul.mubr.bf16.gmra.mrb[12].mxu1 %v1793_v33 }
  0x48   : > { %801 = vmatprep.mubr.bf16.mxu0 %v1794_v34  ;;  %1646 = vmatprep.mubr.msk.bf16.mxu1 %vm688_vm0, %v1796_v35 }
  0x4f   : > { %802 = vmatmul.mubr.bf16.gmra.mrb[16].mxu0 %v1797_v36  ;;  %1647 = vmatmul.mubr.msk.bf16.vlgmr.msra.gmra.mrb[16].mxu1 %vm688_vm0, %v1798_v37 }
  0x50   : > { %809 = vmatprep.mubr.bf16.mxu0 %v1799_v38  ;;  %1650 = vmatprep.mubr.msk.bf16.mxu1 %vm688_vm0, %v1801_v39 }
  0x57   : > { %810 = vmatmul.mubr.bf16.gmra.mrb[20].mxu0 %v1802_v40  ;;  %1651 = vmatmul.mubr.msk.bf16.gmra.mrb[20].mxu1 %vm688_vm0, %v1803_v41 }
  0x58   : > { %817 = vmatprep.mubr.bf16.mxu0 %v1804_v42  ;;  %1654 = vmatprep.mubr.msk.bf16.mxu1 %vm688_vm0, %v1806_v43 }
  0x5f   : > { %818 = vmatmul.mubr.bf16.gmra.mrb[24].mxu0 %v1807_v44  ;;  %1655 = vmatmul.mubr.msk.bf16.gmra.mrb[24].mxu1 %vm688_vm0, %v1808_v45 }
  0x60   : > { %825 = vmatprep.mubr.bf16.mxu0 %v1809_v46  ;;  %1658 = vmatprep.mubr.msk.bf16.mxu1 %vm688_vm0, %v1811_v47 }
  0x67   : > { %826 = vmatmul.mubr.bf16.gmra.mrb[28].mxu0 %v1812_v48  ;;  %1659 = vmatmul.mubr.msk.bf16.gmra.mrb[28].mxu1 %vm688_vm0, %v1813_v49 }
  0x68   : > { %833 = vmatprep.mubr.bf16.mxu0 %v1814_v50  ;;  %1662 = vmatprep.mubr.msk.bf16.mxu1 %vm688_vm0, %v1816_v51  ;;  %v1497_v50 = vld [vmem:[%s2142_s11 + $0x8] sm:$0xff]   ;;  %v1434_v51 = vld [vmem:[%s2142_s11] sm:$0xff]  }
  0x6f   : > { %834 = vmatmul.mubr.bf16.gmra.mrb[32].mxu0 %v1817_v52  ;;  %1663 = vmatmul.mubr.msk.bf16.gmra.mrb[32].mxu1 %vm688_vm0, %v1818_v53 }
  0x70   : > { %841 = vmatprep.mubr.bf16.mxu0 %v1819_v54  ;;  %1666 = vmatprep.mubr.msk.bf16.mxu1 %vm688_vm0, %v1821_v55  ;;  %v1439_v55 = vunpack.c.l.bf16 %v1497_v50 }
  0x77   : > { %842 = vmatmul.mubr.bf16.gmra.mrb[36].mxu0 %v1822_v56  ;;  %1667 = vmatmul.mubr.msk.bf16.gmra.mrb[36].mxu1 %vm688_vm0, %v1823_v57 }
  0x78   : > { %849 = vmatprep.mubr.bf16.mxu0 %v1824_v58  ;;  %1670 = vmatprep.mubr.msk.bf16.mxu1 %vm688_vm0, %v1826_v59 }
  0x7f   : > { %850 = vmatmul.mubr.bf16.gmra.mrb[40].mxu0 %v1827_v60  ;;  %1671 = vmatmul.mubr.msk.bf16.gmra.mrb[40].mxu1 %vm688_vm0, %v1828_v61  ;;  %v1435_v60 = vunpack.c.l.bf16 %v1434_v51 }
  0x80   : > { %857 = vmatprep.mubr.bf16.mxu0 %v1829_v62  ;;  %1674 = vmatprep.mubr.msk.bf16.mxu1 %vm688_vm0, %v1831_v63 }
  0x87   : > { %858 = vmatmul.mubr.bf16.gmra.mrb[44].mxu0 %v1832_v0  ;;  %1675 = vmatmul.mubr.msk.bf16.gmra.mrb[44].mxu1 %vm688_vm0, %v1833_v1  ;;  %v1440_v1 = vunpack.c.h.bf16 %v1497_v50  ;;  %v1501_v50 = vld [vmem:[%s2142_s11 + $0x28] sm:$0xff]  }
 0x102   : > { %v1528_v2 = vpop.f32.mrb[0].mxu0  ;;  %v1600_v3 = vpop.f32.mrb[0].mxu1 }
 0x103   : > { %v1529_v4 = vpop.f32.mrb[1].mxu0  ;;  %v1601_v5 = vpop.f32.mrb[1].mxu1 }
 0x104   : > { %v1530_v6 = vadd.f32 %v1529_v4, %v1528_v2  ;;  %v2120_v7 = vadd.f32 %v1601_v5, %v1600_v3  ;;  %v1531_v8 = vpop.f32.mrb[2].mxu0  ;;  %v1603_v9 = vpop.f32.mrb[2].mxu1 }
 0x105   : > { %v1532_v10 = vpop.f32.mrb[3].mxu0  ;;  %v1604_v11 = vpop.f32.mrb[3].mxu1 }
 0x106   : > { %v1533_v12 = vadd.f32 %v1532_v10, %v1531_v8  ;;  %v2122_v13 = vadd.f32 %v1604_v11, %v1603_v9  ;;  %v1436_v9 = vunpack.c.h.bf16 %v1434_v51 }
 0x10a   : > { %v1534_v14 = vpop.f32.mrb[4].mxu0  ;;  %v1606_v15 = vpop.f32.mrb[4].mxu1 }
 0x10b   : > { %v1535_v16 = vpop.f32.mrb[5].mxu0  ;;  %v1607_v17 = vpop.f32.mrb[5].mxu1 }
 0x10c   : > { %v1536_v18 = vadd.f32 %v1535_v16, %v1534_v14  ;;  %v2124_v19 = vadd.f32 %v1607_v17, %v1606_v15  ;;  %v1537_v20 = vpop.f32.mrb[6].mxu0  ;;  %v1609_v21 = vpop.f32.mrb[6].mxu1  ;;  %v1498_v17 = vld [vmem:[%s2142_s11 + $0x10] sm:$0xff]  }
 0x10d   : > { %v1538_v22 = vpop.f32.mrb[7].mxu0  ;;  %v1610_v23 = vpop.f32.mrb[7].mxu1 }
 0x10e   : > { %v1539_v24 = vadd.f32 %v1538_v22, %v1537_v20  ;;  %v2126_v25 = vadd.f32 %v1610_v23, %v1609_v21 }
 0x112   : > { %v1540_v26 = vpop.f32.mrb[8].mxu0  ;;  %v1612_v27 = vpop.f32.mrb[8].mxu1 }
 0x113   : > { %v1541_v28 = vpop.f32.mrb[9].mxu0  ;;  %v1613_v29 = vpop.f32.mrb[9].mxu1 }
 0x114   : > { %v2128_v30 = vadd.f32 %v1541_v28, %v1540_v26  ;;  %v2130_v31 = vadd.f32 %v1613_v29, %v1612_v27  ;;  %v1543_v32 = vpop.f32.mrb[10].mxu0  ;;  %v1615_v33 = vpop.f32.mrb[10].mxu1  ;;  %v1443_v28 = vunpack.c.l.bf16 %v1498_v17 }
 0x115   : > { %v1544_v34 = vpop.f32.mrb[11].mxu0  ;;  %v1616_v35 = vpop.f32.mrb[11].mxu1 }
 0x116   : > { %v2132_v36 = vadd.f32 %v1544_v34, %v1543_v32  ;;  %v2134_v37 = vadd.f32 %v1616_v35, %v1615_v33 }
 0x11a   : > { %v1546_v38 = vpop.f32.mrb[12].mxu0  ;;  %v1618_v39 = vpop.f32.mrb[12].mxu1 }
 0x11b   : > { %v1547_v40 = vpop.f32.mrb[13].mxu0  ;;  %v1619_v41 = vpop.f32.mrb[13].mxu1 }
 0x11c   : > { %v1548_v42 = vadd.f32 %v1547_v40, %v1546_v38  ;;  %v2137_v43 = vadd.f32 %v1619_v41, %v1618_v39  ;;  %v1549_v44 = vpop.f32.mrb[14].mxu0  ;;  %v1621_v45 = vpop.f32.mrb[14].mxu1 }
 0x11d   : > { %v1550_v46 = vpop.f32.mrb[15].mxu0  ;;  %v1622_v47 = vpop.f32.mrb[15].mxu1 }
 0x11e   : > { %v1551_v48 = vadd.f32 %v1550_v46, %v1549_v44  ;;  %v2144_v49 = vadd.f32 %v1622_v47, %v1621_v45  ;;  %v1444_v44 = vunpack.c.h.bf16 %v1498_v17  ;;  %v1502_v17 = vld [vmem:[%s2142_s11 + $0x30] sm:$0xff]  }
 0x122   : > { %v1552_v52 = vpop.f32.mrb[16].mxu0  ;;  %v1648_v53 = vpop.f32.mrb[16].mxu1 }
 0x123   : > { %v941_v54 = vadd.f32 %v1648_v53, %v1536_v18  ;;  %v1553_v56 = vpop.f32.mrb[17].mxu0  ;;  %v932_v57 = vpop.f32.mrb[17].mxu1 }
 0x124   : > { %v2151_v58 = vadd.f32 %v1553_v56, %v1552_v52  ;;  %v933_v59 = vadd.f32 %v1530_v6, %v932_v57  ;;  %v1555_v61 = vpop.f32.mrb[18].mxu0  ;;  %v1649_v62 = vpop.f32.mrb[18].mxu1  ;;  %v1499_v6 = vld [vmem:[%s2142_s11 + $0x18] sm:$0xff]  }
 0x125   : > { %v1061_v63 = vmax.f32 %v941_v54, 0.0  ;;  %v944_v0 = vadd.f32 %v1649_v62, %v1539_v24  ;;  %v1556_v2 = vpop.f32.mrb[19].mxu0  ;;  %v935_v3 = vpop.f32.mrb[19].mxu1  ;;  %v1447_v22 = vunpack.c.l.bf16 %v1499_v6  ;;  %v1448_v35 = vunpack.c.h.bf16 %v1499_v6 }
 0x126   : > { %v1059_v4 = vmax.f32 %v933_v59, 0.0  ;;  %v2153_v5 = vadd.f32 %v1556_v2, %v1555_v61  ;;  %v936_v8 = vadd.f32 %v1533_v12, %v935_v3  ;;  %v1456_v2 = vunpack.c.h.bf16 %v1501_v50 }
 0x127   : > { %v1157_v10 = vadd.f32 %v1439_v55, %v1061_v63  ;;  %v1062_v11 = vmax.f32 %v944_v0, 0.0 }
 0x128   : > { %v1155_v14 = vadd.f32 %v1435_v60, %v1059_v4  ;;  %v1060_v15 = vmax.f32 %v936_v8, 0.0 }
 0x129   : > { %1189 = vst.msk [vmem:[%s2156_s19 + $0x10] sm:$0xff] %vm688_vm0, %v1157_v10  ;;  %v1158_v16 = vadd.f32 %v1440_v1, %v1062_v11 }
 0x12a   : > { %1187 = vst.msk [vmem:[%s2156_s19] sm:$0xff] %vm688_vm0, %v1155_v14  ;;  %v1156_v18 = vadd.f32 %v1436_v9, %v1060_v15  ;;  %v1558_v12 = vpop.f32.mrb[20].mxu0  ;;  %v1652_v20 = vpop.f32.mrb[20].mxu1 }
 0x12b   : > { %1190 = vst.msk [vmem:[%s2156_s19 + $0x18] sm:$0xff] %vm688_vm0, %v1158_v16  ;;  %v957_v21 = vadd.f32 %v1652_v20, %v1548_v42  ;;  %v1559_v23 = vpop.f32.mrb[21].mxu0  ;;  %v948_v24 = vpop.f32.mrb[21].mxu1 }
 0x12c   : > { %1188 = vst.msk [vmem:[%s2156_s19 + $0x8] sm:$0xff] %vm688_vm0, %v1156_v18  ;;  %v1560_v26 = vadd.f32 %v1559_v23, %v1558_v12  ;;  %v949_v27 = vadd.f32 %v2128_v30, %v948_v24  ;;  %v1561_v29 = vpop.f32.mrb[22].mxu0  ;;  %v1653_v32 = vpop.f32.mrb[22].mxu1 }
 0x12d   : > { %v1065_v33 = vmax.f32 %v957_v21, 0.0  ;;  %v960_v34 = vadd.f32 %v1653_v32, %v1551_v48  ;;  %v1562_v38 = vpop.f32.mrb[23].mxu0  ;;  %v951_v39 = vpop.f32.mrb[23].mxu1  ;;  %v1500_v48 = vld [vmem:[%s2142_s11 + $0x20] sm:$0xff]   ;;  %v1503_v21 = vld [vmem:[%s2142_s11 + $0x38] sm:$0xff]  }
 0x12e   : > { %v1063_v40 = vmax.f32 %v949_v27, 0.0  ;;  %v1563_v41 = vadd.f32 %v1562_v38, %v1561_v29  ;;  %v952_v42 = vadd.f32 %v2132_v36, %v951_v39  ;;  %v1455_v36 = vunpack.c.l.bf16 %v1501_v50 }
 0x12f   : > { %v1161_v45 = vadd.f32 %v1447_v22, %v1065_v33  ;;  %v1066_v30 = vmax.f32 %v960_v34, 0.0  ;;  %v1451_v61 = vunpack.c.l.bf16 %v1500_v48  ;;  %v1452_v11 = vunpack.c.h.bf16 %v1500_v48 }
 0x130   : > { %v1159_v46 = vadd.f32 %v1443_v28, %v1063_v40  ;;  %v1064_v47 = vmax.f32 %v952_v42, 0.0  ;;  %v1463_v29 = vunpack.c.l.bf16 %v1503_v21  ;;  %v1460_v34 = vunpack.c.h.bf16 %v1502_v17 }
 0x131   : > { %1193 = vst.msk [vmem:[%s2156_s19 + $0x30] sm:$0xff] %vm688_vm0, %v1161_v45  ;;  %v1162_v51 = vadd.f32 %v1448_v35, %v1066_v30 }
 0x132   : > { %1191 = vst.msk [vmem:[%s2156_s19 + $0x20] sm:$0xff] %vm688_vm0, %v1159_v46  ;;  %v1160_v52 = vadd.f32 %v1444_v44, %v1064_v47  ;;  %v1564_v53 = vpop.f32.mrb[24].mxu0  ;;  %v1656_v54 = vpop.f32.mrb[24].mxu1 }
 0x133   : > { %1194 = vst.msk [vmem:[%s2156_s19 + $0x38] sm:$0xff] %vm688_vm0, %v1162_v51  ;;  %v973_v55 = vadd.f32 %v1656_v54, %v1560_v26  ;;  %v1565_v56 = vpop.f32.mrb[25].mxu0  ;;  %v964_v57 = vpop.f32.mrb[25].mxu1  ;;  %v1459_v26 = vunpack.c.l.bf16 %v1502_v17  ;;  %v1504_v54 = vld [vmem:[%s2142_s11 + $0x40] sm:$0xff]  }
 0x134   : > { %1192 = vst.msk [vmem:[%s2156_s19 + $0x28] sm:$0xff] %vm688_vm0, %v1160_v52  ;;  %v1566_v59 = vadd.f32 %v1565_v56, %v1564_v53  ;;  %v965_v60 = vadd.f32 %v2151_v58, %v964_v57  ;;  %v1567_v62 = vpop.f32.mrb[26].mxu0  ;;  %v1657_v63 = vpop.f32.mrb[26].mxu1 }
 0x135   : > { %v1069_v0 = vmax.f32 %v973_v55, 0.0  ;;  %v976_v1 = vadd.f32 %v1657_v63, %v1563_v41  ;;  %v1568_v3 = vpop.f32.mrb[27].mxu0  ;;  %v967_v4 = vpop.f32.mrb[27].mxu1  ;;  %v1464_v41 = vunpack.c.h.bf16 %v1503_v21 }
 0x136   : > { %v1067_v8 = vmax.f32 %v965_v60, 0.0  ;;  %v1569_v9 = vadd.f32 %v1568_v3, %v1567_v62  ;;  %v968_v10 = vadd.f32 %v2153_v5, %v967_v4  ;;  %v1467_v62 = vunpack.c.l.bf16 %v1504_v54 }
 0x137   : > { %v1165_v58 = vadd.f32 %v1455_v36, %v1069_v0  ;;  %v1070_v14 = vmax.f32 %v976_v1, 0.0 }
 0x138   : > { %v1163_v15 = vadd.f32 %v1451_v61, %v1067_v8  ;;  %v1068_v6 = vmax.f32 %v968_v10, 0.0 }
 0x139   : > { %1197 = vst.msk [vmem:[%s2156_s19 + $0x50] sm:$0xff] %vm688_vm0, %v1165_v58  ;;  %v1166_v16 = vadd.f32 %v1456_v2, %v1070_v14  ;;  %v1468_v2 = vunpack.c.h.bf16 %v1504_v54 }
 0x13a   : > { %1195 = vst.msk [vmem:[%s2156_s19 + $0x40] sm:$0xff] %vm688_vm0, %v1163_v15  ;;  %v1164_v18 = vadd.f32 %v1452_v11, %v1068_v6  ;;  %v1570_v12 = vpop.f32.mrb[28].mxu0  ;;  %v1660_v20 = vpop.f32.mrb[28].mxu1  ;;  %v1505_v11 = vld [vmem:[%s2142_s11 + $0x48] sm:$0xff]  }
 0x13b   : > { %1198 = vst.msk [vmem:[%s2156_s19 + $0x58] sm:$0xff] %vm688_vm0, %v1166_v16  ;;  %v1571_v22 = vpop.f32.mrb[29].mxu0  ;;  %v980_v5 = vpop.f32.mrb[29].mxu1 }
 0x13c   : > { %1196 = vst.msk [vmem:[%s2156_s19 + $0x48] sm:$0xff] %vm688_vm0, %v1164_v18  ;;  %v1572_v23 = vadd.f32 %v1571_v22, %v1570_v12  ;;  %v981_v24 = vadd.f32 %v1566_v59, %v980_v5  ;;  %v1573_v27 = vpop.f32.mrb[30].mxu0  ;;  %v1661_v28 = vpop.f32.mrb[30].mxu1 }
 0x13d   : > { %v1574_v32 = vpop.f32.mrb[31].mxu0  ;;  %v983_v33 = vpop.f32.mrb[31].mxu1 }
 0x13e   : > { %v989_v35 = vadd.f32 %v1660_v20, %v1572_v23  ;;  %v1071_v38 = vmax.f32 %v981_v24, 0.0  ;;  %v1575_v39 = vadd.f32 %v1574_v32, %v1573_v27  ;;  %v984_v40 = vadd.f32 %v1569_v9, %v983_v33  ;;  %v1509_v24 = vld [vmem:[%s2142_s11 + $0x68] sm:$0xff]   ;;  %v1506_v33 = vld [vmem:[%s2142_s11 + $0x50] sm:$0xff]  }
 0x13f   : > { %v1471_v20 = vunpack.c.l.bf16 %v1505_v11  ;;  %v1472_v23 = vunpack.c.h.bf16 %v1505_v11 }
 0x140   : > { %v1073_v42 = vmax.f32 %v989_v35, 0.0  ;;  %v1167_v44 = vadd.f32 %v1459_v26, %v1071_v38  ;;  %v992_v45 = vadd.f32 %v1661_v28, %v1575_v39  ;;  %v1072_v30 = vmax.f32 %v984_v40, 0.0  ;;  %v1508_v26 = vld [vmem:[%s2142_s11 + $0x60] sm:$0xff]  }
 0x141   : > { %v1487_v35 = vunpack.c.l.bf16 %v1509_v24  ;;  %v1483_v40 = vunpack.c.l.bf16 %v1508_v26 }
 0x142   : > { %v1169_v46 = vadd.f32 %v1463_v29, %v1073_v42  ;;  %1199 = vst.msk [vmem:[%s2156_s19 + $0x60] sm:$0xff] %vm688_vm0, %v1167_v44  ;;  %v1074_v47 = vmax.f32 %v992_v45, 0.0  ;;  %v1168_v50 = vadd.f32 %v1460_v34, %v1072_v30  ;;  %v1576_v51 = vpop.f32.mrb[32].mxu0  ;;  %v1664_v48 = vpop.f32.mrb[32].mxu1 }
 0x143   : > { %v1577_v52 = vpop.f32.mrb[33].mxu0  ;;  %v996_v53 = vpop.f32.mrb[33].mxu1 }
 0x144   : > { %1201 = vst.msk [vmem:[%s2156_s19 + $0x70] sm:$0xff] %vm688_vm0, %v1169_v46  ;;  %v1170_v55 = vadd.f32 %v1464_v41, %v1074_v47  ;;  %1200 = vst.msk [vmem:[%s2156_s19 + $0x68] sm:$0xff] %vm688_vm0, %v1168_v50  ;;  %v1578_v36 = vadd.f32 %v1577_v52, %v1576_v51  ;;  %v1579_v56 = vpop.f32.mrb[34].mxu0  ;;  %v1665_v57 = vpop.f32.mrb[34].mxu1  ;;  %v1488_v46 = vunpack.c.h.bf16 %v1509_v24  ;;  %v1475_v50 = vunpack.c.l.bf16 %v1506_v33 }
 0x145   : > { %v1580_v59 = vpop.f32.mrb[35].mxu0  ;;  %v999_v60 = vpop.f32.mrb[35].mxu1  ;;  %v1484_v52 = vunpack.c.h.bf16 %v1508_v26 }
 0x146   : > { %1202 = vst.msk [vmem:[%s2156_s19 + $0x78] sm:$0xff] %vm688_vm0, %v1170_v55  ;;  %v997_v61 = vadd.f32 %v1578_v36, %v996_v53  ;;  %v1581_v63 = vadd.f32 %v1580_v59, %v1579_v56 }
 0x148   : > { %v1075_v0 = vmax.f32 %v997_v61, 0.0  ;;  %v1000_v1 = vadd.f32 %v1581_v63, %v999_v60  ;;  %v1510_v63 = vld [vmem:[%s2142_s11 + $0x70] sm:$0xff]  }
 0x149   : > { %v1492_v26 = vunpack.c.h.bf16 %v1510_v63 }
 0x14a   : > { %v1171_v3 = vadd.f32 %v1467_v62, %v1075_v0  ;;  %v1076_v4 = vmax.f32 %v1000_v1, 0.0  ;;  %v1582_v8 = vpop.f32.mrb[36].mxu0  ;;  %v2200_v9 = vpop.f32.mrb[36].mxu1  ;;  %v1511_v62 = vld [vmem:[%s2142_s11 + $0x78] sm:$0xff]  }
 0x14b   : > { %v1583_v10 = vpop.f32.mrb[37].mxu0  ;;  %v1012_v58 = vpop.f32.mrb[37].mxu1  ;;  %v1495_v11 = vunpack.c.l.bf16 %v1511_v62 }
 0x14c   : > { %1203 = vst.msk [vmem:[%s2156_s19 + $0x80] sm:$0xff] %vm688_vm0, %v1171_v3  ;;  %v1172_v14 = vadd.f32 %v1468_v2, %v1076_v4  ;;  %v1584_v15 = vadd.f32 %v1583_v10, %v1582_v8  ;;  %v1585_v6 = vpop.f32.mrb[38].mxu0  ;;  %v2205_v16 = vpop.f32.mrb[38].mxu1  ;;  %v1507_v8 = vld [vmem:[%s2142_s11 + $0x58] sm:$0xff]  }
 0x14d   : > { %v1586_v17 = vpop.f32.mrb[39].mxu0  ;;  %v1015_v18 = vpop.f32.mrb[39].mxu1 }
 0x14e   : > { %1204 = vst.msk [vmem:[%s2156_s19 + $0x88] sm:$0xff] %vm688_vm0, %v1172_v14  ;;  %v1005_v12 = vadd.f32 %v1664_v48, %v1584_v15  ;;  %v1587_v21 = vadd.f32 %v1586_v17, %v1585_v6  ;;  %v1491_v15 = vunpack.c.l.bf16 %v1510_v63 }
 0x150   : > { %v1077_v22 = vmax.f32 %v1005_v12, 0.0  ;;  %v1008_v5 = vadd.f32 %v1665_v57, %v1587_v21  ;;  %v1476_v57 = vunpack.c.h.bf16 %v1506_v33  ;;  %v1496_v21 = vunpack.c.h.bf16 %v1511_v62 }
 0x152   : > { %v1173_v27 = vadd.f32 %v1471_v20, %v1077_v22  ;;  %v1078_v28 = vmax.f32 %v1008_v5, 0.0  ;;  %v1588_v29 = vpop.f32.mrb[40].mxu0  ;;  %v1672_v32 = vpop.f32.mrb[40].mxu1  ;;  %v1479_v5 = vunpack.c.l.bf16 %v1507_v8 }
 0x153   : > { %v1037_v34 = vadd.f32 %v1672_v32, %v2124_v19  ;;  %v1589_v38 = vpop.f32.mrb[41].mxu0  ;;  %v1028_v39 = vpop.f32.mrb[41].mxu1 }
 0x154   : > { %1205 = vst.msk [vmem:[%s2156_s19 + $0x90] sm:$0xff] %vm688_vm0, %v1173_v27  ;;  %v1174_v41 = vadd.f32 %v1472_v23, %v1078_v28  ;;  %v1590_v42 = vadd.f32 %v1589_v38, %v1588_v29  ;;  %v1029_v44 = vadd.f32 %v2120_v7, %v1028_v39  ;;  %v1591_v45 = vpop.f32.mrb[42].mxu0  ;;  %v1673_v30 = vpop.f32.mrb[42].mxu1 }
 0x155   : > { %v1085_v47 = vmax.f32 %v1037_v34, 0.0  ;;  %v1040_v51 = vadd.f32 %v1673_v30, %v2126_v25  ;;  %v1592_v19 = vpop.f32.mrb[43].mxu0  ;;  %v1031_v48 = vpop.f32.mrb[43].mxu1  ;;  %v1480_v34 = vunpack.c.h.bf16 %v1507_v8 }
 0x156   : > { %1206 = vst.msk [vmem:[%s2156_s19 + $0x98] sm:$0xff] %vm688_vm0, %v1174_v41  ;;  %v1013_v53 = vadd.f32 %v1590_v42, %v1012_v58  ;;  %v1083_v54 = vmax.f32 %v1029_v44, 0.0  ;;  %v1593_v55 = vadd.f32 %v1592_v19, %v1591_v45  ;;  %v1032_v7 = vadd.f32 %v2122_v13, %v1031_v48 }
 0x157   : > { %v1181_v36 = vadd.f32 %v1487_v35, %v1085_v47  ;;  %v1086_v56 = vmax.f32 %v1040_v51, 0.0 }
 0x158   : > { %v1079_v25 = vmax.f32 %v1013_v53, 0.0  ;;  %v1179_v59 = vadd.f32 %v1483_v40, %v1083_v54  ;;  %v1016_v60 = vadd.f32 %v1593_v55, %v1015_v18  ;;  %v1084_v61 = vmax.f32 %v1032_v7, 0.0 }
 0x159   : > { %1213 = vst.msk [vmem:[%s2156_s19 + $0xd0] sm:$0xff] %vm688_vm0, %v1181_v36  ;;  %v1182_v0 = vadd.f32 %v1488_v46, %v1086_v56 }
 0x15a   : > { %v1175_v1 = vadd.f32 %v1475_v50, %v1079_v25  ;;  %1211 = vst.msk [vmem:[%s2156_s19 + $0xc0] sm:$0xff] %vm688_vm0, %v1179_v59  ;;  %v1080_v13 = vmax.f32 %v1016_v60, 0.0  ;;  %v1180_v2 = vadd.f32 %v1484_v52, %v1084_v61  ;;  %v1594_v3 = vpop.f32.mrb[44].mxu0  ;;  %v1676_v4 = vpop.f32.mrb[44].mxu1 }
 0x15b   : > { %1214 = vst.msk [vmem:[%s2156_s19 + $0xd8] sm:$0xff] %vm688_vm0, %v1182_v0  ;;  %v1053_v10 = vadd.f32 %v1676_v4, %v2137_v43  ;;  %v1595_v58 = vpop.f32.mrb[45].mxu0  ;;  %v1044_v14 = vpop.f32.mrb[45].mxu1 }
 0x15c   : > { %1207 = vst.msk [vmem:[%s2156_s19 + $0xa0] sm:$0xff] %vm688_vm0, %v1175_v1  ;;  %v1176_v6 = vadd.f32 %v1476_v57, %v1080_v13  ;;  %1212 = vst.msk [vmem:[%s2156_s19 + $0xc8] sm:$0xff] %vm688_vm0, %v1180_v2  ;;  %v1596_v17 = vadd.f32 %v1595_v58, %v1594_v3  ;;  %v1045_v18 = vadd.f32 %v2130_v31, %v1044_v14  ;;  %v1597_v12 = vpop.f32.mrb[46].mxu0  ;;  %v1677_v20 = vpop.f32.mrb[46].mxu1 }
 0x15d   : > { %v1089_v22 = vmax.f32 %v1053_v10, 0.0  ;;  %v1056_v43 = vadd.f32 %v1677_v20, %v2144_v49  ;;  %v1598_v23 = vpop.f32.mrb[47].mxu0  ;;  %v1047_v24 = vpop.f32.mrb[47].mxu1 }
 0x15e   : > { %1208 = vst.msk [vmem:[%s2156_s19 + $0xa8] sm:$0xff] %vm688_vm0, %v1176_v6  ;;  %v1021_v27 = vadd.f32 %v2200_v9, %v1596_v17  ;;  %v1087_v28 = vmax.f32 %v1045_v18, 0.0  ;;  %v1599_v31 = vadd.f32 %v1598_v23, %v1597_v12  ;;  %v1048_v29 = vadd.f32 %v2134_v37, %v1047_v24 }
 0x15f   : > { %v1185_v32 = vadd.f32 %v1495_v11, %v1089_v22  ;;  %v1090_v33 = vmax.f32 %v1056_v43, 0.0 }
 0x160   : > { %v1081_v49 = vmax.f32 %v1021_v27, 0.0  ;;  %v1183_v35 = vadd.f32 %v1491_v15, %v1087_v28  ;;  %v1024_v38 = vadd.f32 %v2205_v16, %v1599_v31  ;;  %v1088_v39 = vmax.f32 %v1048_v29, 0.0 }
 0x161   : > { %1217 = vst.msk [vmem:[%s2156_s19 + $0xf0] sm:$0xff] %vm688_vm0, %v1185_v32  ;;  %v1186_v9 = vadd.f32 %v1496_v21, %v1090_v33 }
 0x162   : > { %v1177_v37 = vadd.f32 %v1479_v5, %v1081_v49  ;;  %1215 = vst.msk [vmem:[%s2156_s19 + $0xe0] sm:$0xff] %vm688_vm0, %v1183_v35  ;;  %v1082_v40 = vmax.f32 %v1024_v38, 0.0  ;;  %v1184_v41 = vadd.f32 %v1492_v26, %v1088_v39 }
 0x163   : > { %1218 = vst.msk [vmem:[%s2156_s19 + $0xf8] sm:$0xff] %vm688_vm0, %v1186_v9 }
 0x164   : > { %1209 = vst.msk [vmem:[%s2156_s19 + $0xb0] sm:$0xff] %vm688_vm0, %v1177_v37  ;;  %v1178_v16 = vadd.f32 %v1480_v34, %v1082_v40  ;;  %1216 = vst.msk [vmem:[%s2156_s19 + $0xe8] sm:$0xff] %vm688_vm0, %v1184_v41 }
 0x166   : > { %1210 = vst.msk [vmem:[%s2156_s19 + $0xb8] sm:$0xff] %vm688_vm0, %v1178_v16 }
 0x167   : > { %1847 = shalt.err (!%p1844_p5)
}
 0x168   : > { %s1848_s7 = scalar_lea.hbm %s2252_s28, 4096  ;;  %s1852_s10 = scalar_lea.hbm %s2313_s3, 8192 }
 0x169   : > { %p1849_p6 = scmp.ne.s32.totalorder %s2252_s28, %s1848_s7  ;;  %p1853_p10 = scmp.lt.u32.totalorder %s2252_s28, %s2313_s3 }
 0x16a   : > { %p1854_p11 = scmp.lt.u32.totalorder %s1852_s10, %s1848_s7  ;;  %p1856_p13 = scmp.lt.u32.totalorder %s1848_s7, %s2252_s28 }
 0x16b   : > { %p1850_p7 = pnand %p1849_p6, %p1977_p4 }
 0x16c   : > { %p1855_p12 = por %p1854_p11, %p1853_p10 }
 0x16d   : > { %p1851_p9 = pneg %p1850_p7 }
 0x16e   : > { %p1857_p0 = por %p1856_p13, %p1855_p12 }
 0x170   : > { %p1858_p1 = pnand %p1857_p0, %p1851_p9 }
 0x172   : > { %1861 = shalt.err (!%p1858_p1)
}
 0x173   : > { %s1915_s18 = smov 128   ;;  %s1916_s19 = smov 8  }
 0x174   : > { %1695 = dma.vmem_to_hbm [thread:$0]  (%p1977_p4), %s2254_s23, 4096, %s2252_s28, %s2264_s15, %s1915_s18, %s1915_s18, %s1916_s19  }
 0x175 PF: > { %p1701_p2 = scmp.ge.s32.totalorder %s1912_s17, 2  ;;  %s1250_s21 = sand.u32 1, %s1892_s12  }
 0x176   : > { %s1251_s26 = scalar_lea.sflag [#allocation3], %s1250_s21 }
 0x177   : > { %p1698_p3 = pnand %p1701_p2, %p1984_p8 }
 0x179   : > { %1887 = dma.done.wait (!%p1698_p3), %s1251_s26, 4096  }
 0x17a   : > { %1889 = vsyncadd (!%p1698_p3), %s1251_s26, 4294963200  ;;  %s16_s17 = sadd.s32 1, %s1912_s17   ;;  %s2316_s12 = smov %s1896_s13 }
 0x17b   : > { %p13_p5 = scmp.ge.s32.totalorder %s16_s17, 4   ;;  %s2317_s13 = smov %s1900_s14 }
 0x17c   : > { %s2318_s14 = smov %s1990_s25  ;;  %s2319_s15 = smov %s1908_s16 }
 0x17d   : > { %s2320_s16 = smov %s2322_s20  ;;  %15 = sbr.rel (!%p13_p5) target bundleno = 4 (0x4), region = 70 }
 0x184   :  { %1256 = vsyncpa [#allocation3], 1 }
 0x185   :  { %1258 = vsyncpa [#allocation3 + $0x1], 1 }

</bundles_post_ra>
